<compile_context>
chip_gen: v7x
topology: tpu7x:2x2x1
jax: 0.10.0
libtpu: 0.0.40
codegen_flags: <defaults>
</compile_context>

<pallas_src>
import functools

import jax
import jax.numpy as jnp
from jax.experimental import pallas as pl
from jax.experimental.pallas import tpu as pltpu


def _round_up(x, m):
    return ((x + m - 1) // m) * m


def gru_kernel(x_ref, wx_ref, bi_ref, whh_ref, bhn_ref, wfc_ref, bfc_ref,
               out_ref, h_ref, gi_ref,
               *, hp, tc, bt, seq_len, has_tail, unroll):
    """One (batch_tile, time_chunk) grid step.

    x_ref   : (Tc, Bt, Dp)    time-major input chunk (lane-dense Dp)
    wx_ref  : (Dp, 3*Hp)      x-side gate weights, columns = [r | z | n]
    bi_ref  : (1, 3*Hp)       x-side biases ([b_ir+b_hr | b_iz+b_hz | b_in])
    whh_ref : (Hp, 3*Hp)      h-side gate weights, columns = [r | z | n]
    bhn_ref : (1, Hp)         b_hn (kept separate: n = tanh(i_n + r*(h_n+b_hn)))
    wfc_ref : (Hp, Op), bfc_ref: (1, Op)   final Linear (lane-padded output)
    out_ref : (Bt, Op)
    h_ref   : (Bt, Hp)        hidden-state carry (VMEM scratch)
    gi_ref  : (Tc, Bt, 3*Hp)  per-chunk x-side pre-activations (VMEM scratch)
    """
    c = pl.program_id(1)                      # time-chunk index (sequential)

    @pl.when(c == 0)
    def _init():
        h_ref[...] = jnp.zeros_like(h_ref)

    # ---- per-chunk batched input projection (off the serial path) ----------
    x2 = x_ref[...].reshape(tc * bt, -1)                       # (Tc*Bt, Dp)
    gi_ref[...] = (jnp.dot(x2, wx_ref[...],
                           preferred_element_type=jnp.float32)
                   + bi_ref[...]).reshape(tc, bt, 3 * hp)

    whh = whh_ref[...]                                          # resident
    bhn = jnp.broadcast_to(bhn_ref[...], (bt, hp))              # hoisted
    base = c * tc

    def step(i, h):
        gh = jnp.dot(h, whh, preferred_element_type=jnp.float32)  # (Bt, 3*Hp)
        gi = gi_ref[i]                                             # (Bt, 3*Hp)
        r = jax.nn.sigmoid(gi[:, 0 * hp:1 * hp] + gh[:, 0 * hp:1 * hp])
        z = jax.nn.sigmoid(gi[:, 1 * hp:2 * hp] + gh[:, 1 * hp:2 * hp])
        n = jnp.tanh(gi[:, 2 * hp:3 * hp] + r * (gh[:, 2 * hp:3 * hp] + bhn))
        h_new = (1.0 - z) * n + z * h
        if has_tail:                           # only emitted for ragged T
            h_new = jnp.where(base + i < seq_len, h_new, h)
        return h_new

    h = jax.lax.fori_loop(0, tc, step, h_ref[...], unroll=unroll)
    h_ref[...] = h

    @pl.when(c == pl.num_programs(1) - 1)
    def _final():
        out_ref[...] = (jnp.dot(h, wfc_ref[...],
                                preferred_element_type=jnp.float32)
                        + bfc_ref[...])


def gru_model_forward(x, params, *, time_chunk=32):
    """x: (B, T, D) float32. Returns (B, outputDim) float32."""
    B, T, D = x.shape
    w_ih, w_hh, b_ih, b_hh, w_fc, b_fc = (
        params["w_ih"], params["w_hh"], params["b_ih"], params["b_hh"],
        params["w_fc"], params["b_fc"])
    H = w_hh.shape[1]
    O = w_fc.shape[0]

    LANE = 128
    Hp = _round_up(H, LANE)                   # lane-aligned gate width
    Dp = _round_up(D, LANE)                   # lane-dense input block
    Op = _round_up(O, LANE)                   # lane-dense head output

    # Batch tiling: one 8-row tile for tiny B; split into two tiles for B > 8
    # so the "parallel" grid axis feeds both TensorCores on v7x.
    if B <= 8:
        Bp, Bt = 8, 8
    else:
        Bp = _round_up(B, 16)
        Bt = Bp // 2
    nb = Bp // Bt

    # Time chunking: prefer a divisor of T so no per-step tail mask is needed.
    tcap = max(1, min(time_chunk, T))
    Tc = max(d for d in range(1, tcap + 1) if T % d == 0)
    has_tail = False
    if Tc < max(1, tcap // 4):                # no decent divisor -> masked tail
        Tc = tcap
        has_tail = (T % Tc != 0)
    n_chunks = -(-T // Tc)
    Tp = n_chunks * Tc
    unroll = min(8, Tc)

    # --- gate weights, PyTorch gate order r, z, n ---------------------------
    wir, wiz, win = w_ih[:H], w_ih[H:2 * H], w_ih[2 * H:]
    whr, whz, whn = w_hh[:H], w_hh[H:2 * H], w_hh[2 * H:]

    # x-side weights (Dp, 3*Hp); columns are lane-aligned blocks [r | z | n].
    wx = jnp.zeros((Dp, 3 * Hp), jnp.float32)
    wx = wx.at[:D, 0 * Hp:0 * Hp + H].set(wir.T)
    wx = wx.at[:D, 1 * Hp:1 * Hp + H].set(wiz.T)
    wx = wx.at[:D, 2 * Hp:2 * Hp + H].set(win.T)

    # x-side biases with the r/z hidden biases pre-summed; b_in kept in the
    # n-block (b_hn stays separate for the r * (h_n + b_hn) term).
    bi = jnp.zeros((1, 3 * Hp), jnp.float32)
    bi = bi.at[0, 0 * Hp:0 * Hp + H].set(b_ih[:H] + b_hh[:H])
    bi = bi.at[0, 1 * Hp:1 * Hp + H].set(b_ih[H:2 * H] + b_hh[H:2 * H])
    bi = bi.at[0, 2 * Hp:2 * Hp + H].set(b_ih[2 * H:])

    # h-side weights (Hp, 3*Hp) and the separate b_hn.
    whh = jnp.zeros((Hp, 3 * Hp), jnp.float32)
    whh = whh.at[:H, 0 * Hp:0 * Hp + H].set(whr.T)
    whh = whh.at[:H, 1 * Hp:1 * Hp + H].set(whz.T)
    whh = whh.at[:H, 2 * Hp:2 * Hp + H].set(whn.T)
    bhn = jnp.zeros((1, Hp), jnp.float32).at[0, :H].set(b_hh[2 * H:])

    # Final Linear (padded hidden rows / output lanes are zero -> inert).
    wfc = jnp.zeros((Hp, Op), jnp.float32).at[:H, :O].set(w_fc.T)
    bfc = jnp.zeros((1, Op), jnp.float32).at[0, :O].set(b_fc)

    # x: (B, T, D) -> time-major, zero-padded (Tp, Bp, Dp)
    x_tm = jnp.zeros((Tp, Bp, Dp), jnp.float32).at[:T, :B, :D].set(
        jnp.transpose(x, (1, 0, 2)))

    kernel = functools.partial(gru_kernel, hp=Hp, tc=Tc, bt=Bt, seq_len=T,
                               has_tail=has_tail, unroll=unroll)

    out_full = pl.pallas_call(
        kernel,
        out_shape=jax.ShapeDtypeStruct((Bp, Op), jnp.float32),
        grid_spec=pltpu.PrefetchScalarGridSpec(
            num_scalar_prefetch=0,
            grid=(nb, n_chunks),
            in_specs=[
                pl.BlockSpec((Tc, Bt, Dp), lambda b, c: (c, b, 0)),      # x
                pl.BlockSpec((Dp, 3 * Hp), lambda b, c: (0, 0)),         # W_x
                pl.BlockSpec((1, 3 * Hp), lambda b, c: (0, 0)),          # b_x
                pl.BlockSpec((Hp, 3 * Hp), lambda b, c: (0, 0)),         # W_hh
                pl.BlockSpec((1, Hp), lambda b, c: (0, 0)),              # b_hn
                pl.BlockSpec((Hp, Op), lambda b, c: (0, 0)),             # W_fc^T
                pl.BlockSpec((1, Op), lambda b, c: (0, 0)),              # b_fc
            ],
            out_specs=pl.BlockSpec((Bt, Op), lambda b, c: (b, 0)),
            scratch_shapes=[
                pltpu.VMEM((Bt, Hp), jnp.float32),           # hidden carry
                pltpu.VMEM((Tc, Bt, 3 * Hp), jnp.float32),   # per-chunk gi
            ]),
        compiler_params=pltpu.CompilerParams(
            dimension_semantics=("parallel", "arbitrary"),
            vmem_limit_bytes=48 * 1024 * 1024),
    )(x_tm, wx, bi, whh, bhn, wfc, bfc)

    return out_full[:B, :O]


def gru_model_reference(x, params):
    """Pure-JAX reference matching torch.nn.GRU(batch_first=True) + Linear."""
    w_ih, w_hh, b_ih, b_hh, w_fc, b_fc = (
        params["w_ih"], params["w_hh"], params["b_ih"], params["b_hh"],
        params["w_fc"], params["b_fc"])
    B, T, D = x.shape
    H = w_hh.shape[1]

    def step(h, x_t):
        gi = x_t @ w_ih.T + b_ih
        gh = h @ w_hh.T + b_hh
        i_r, i_z, i_n = gi[:, :H], gi[:, H:2 * H], gi[:, 2 * H:]
        h_r, h_z, h_n = gh[:, :H], gh[:, H:2 * H], gh[:, 2 * H:]
        r = jax.nn.sigmoid(i_r + h_r)
        z = jax.nn.sigmoid(i_z + h_z)
        n = jnp.tanh(i_n + r * h_n)
        return (1.0 - z) * n + z * h, None

    h0 = jnp.zeros((B, H), jnp.float32)
    hn, _ = jax.lax.scan(step, h0, jnp.transpose(x, (1, 0, 2)))
    return hn @ w_fc.T + b_fc


def init_params(key, input_dim, hidden, output_dim):
    ks = jax.random.split(key, 6)
    s = 1.0 / jnp.sqrt(hidden)
    u = lambda k, shape: jax.random.uniform(k, shape, jnp.float32, -s, s)
    return {
        "w_ih": u(ks[0], (3 * hidden, input_dim)),
        "w_hh": u(ks[1], (3 * hidden, hidden)),
        "b_ih": u(ks[2], (3 * hidden,)),
        "b_hh": u(ks[3], (3 * hidden,)),
        "w_fc": u(ks[4], (output_dim, hidden)),
        "b_fc": u(ks[5], (output_dim,)),
    }


if __name__ == "__main__":
    # GRUModel(inputDim=4, hiddenNum=32, outputDim=4, layerNum=1, cell='GRU')
    B, T, D, H, O = 2, 8, 4, 32, 4
    key = jax.random.PRNGKey(0)
    kx, kp = jax.random.split(key)
    x = jax.random.normal(kx, (B, T, D), jnp.float32)
    params = init_params(kp, D, H, O)

    out = jax.block_until_ready(gru_model_forward(x, params))
    ref = gru_model_reference(x, params)
    assert out.shape == (B, O)
    assert jnp.allclose(out, ref, atol=1e-5, rtol=1e-5), (out, ref)
    print("KERNEL_OK")
</pallas_src>

<mosaic_0001>
module attributes {stable_mosaic.version = 11 : i64} {
  func.func @gru_kernel(%arg0: i32, %arg1: i32, %arg2: memref<8x8x128xf32, #tpu.memory_space<vmem>>, %arg3: memref<128x384xf32, #tpu.memory_space<vmem>>, %arg4: memref<1x384xf32, #tpu.memory_space<vmem>>, %arg5: memref<128x384xf32, #tpu.memory_space<vmem>>, %arg6: memref<1x128xf32, #tpu.memory_space<vmem>>, %arg7: memref<128x128xf32, #tpu.memory_space<vmem>>, %arg8: memref<1x128xf32, #tpu.memory_space<vmem>>, %arg9: memref<8x128xf32, #tpu.memory_space<vmem>>, %arg10: memref<8x128xf32, #tpu.memory_space<vmem>>, %arg11: memref<8x8x384xf32, #tpu.memory_space<vmem>>) attributes {dimension_semantics = [#tpu.dimension_semantics<parallel>, #tpu.dimension_semantics<arbitrary>], iteration_bounds = array<i64: 1, 1>, scalar_prefetch = 0 : i64, scratch_operands = 2 : i64, tpu.core_type = #tpu.core_type<tc>, window_params = [{transform_indices = @transform_0, window_bounds = array<i64: 8, 8, 128>}, {pipeline_mode = #tpu.pipeline_mode<synchronous>, transform_indices = @transform_1, window_bounds = array<i64: 128, 384>}, {pipeline_mode = #tpu.pipeline_mode<synchronous>, transform_indices = @transform_2, window_bounds = array<i64: 1, 384>}, {pipeline_mode = #tpu.pipeline_mode<synchronous>, transform_indices = @transform_3, window_bounds = array<i64: 128, 384>}, {pipeline_mode = #tpu.pipeline_mode<synchronous>, transform_indices = @transform_4, window_bounds = array<i64: 1, 128>}, {pipeline_mode = #tpu.pipeline_mode<synchronous>, transform_indices = @transform_5, window_bounds = array<i64: 128, 128>}, {pipeline_mode = #tpu.pipeline_mode<synchronous>, transform_indices = @transform_6, window_bounds = array<i64: 1, 128>}, {transform_indices = @transform_7, window_bounds = array<i64: 8, 128>}]} {
    %c0_i32 = arith.constant 0 : i32
    %0 = arith.cmpi eq, %arg1, %c0_i32 : i32
    %1 = arith.extui %0 : i1 to i32
    %c0_i32_0 = arith.constant 0 : i32
    %2 = arith.cmpi ne, %1, %c0_i32_0 : i32
    scf.if %2 {
      %cst_69 = arith.constant 0.000000e+00 : f32
      %269 = vector.broadcast %cst_69 : f32 to vector<8x128xf32>
      %c0_70 = arith.constant 0 : index
      %c0_71 = arith.constant 0 : index
      %270 = vector.load %arg10[%c0_70, %c0_71] : memref<8x128xf32, #tpu.memory_space<vmem>>, vector<8x128xf32>
      tpu.vector_store %arg10[%c0_70, %c0_71], %269 {strides = array<i32>} : memref<8x128xf32, #tpu.memory_space<vmem>>, vector<8x128xf32>,
    } else {
    }
    %c0 = arith.constant 0 : index
    %c0_1 = arith.constant 0 : index
    %c0_2 = arith.constant 0 : index
    %3 = vector.load %arg2[%c0, %c0_1, %c0_2] : memref<8x8x128xf32, #tpu.memory_space<vmem>>, vector<8x8x128xf32>
    %4 = vector.shape_cast %3 : vector<8x8x128xf32> to vector<64x128xf32>
    %c0_3 = arith.constant 0 : index
    %c0_4 = arith.constant 0 : index
    %5 = vector.load %arg3[%c0_3, %c0_4] : memref<128x384xf32, #tpu.memory_space<vmem>>, vector<128x384xf32>
    %cst = arith.constant dense<0.000000e+00> : vector<64x384xf32>
    %6 = tpu.matmul %4, %5, %cst {dimension_numbers = #tpu.dot_dimension_numbers<[1], [0], [0], [1], [0, 0, 1, 1], [], []>} : vector<64x128xf32>, vector<128x384xf32>, vector<64x384xf32> -> vector<64x384xf32>
    %c0_5 = arith.constant 0 : index
    %c0_6 = arith.constant 0 : index
    %7 = vector.load %arg4[%c0_5, %c0_6] : memref<1x384xf32, #tpu.memory_space<vmem>>, vector<1x384xf32>
    %8 = vector.broadcast %7 : vector<1x384xf32> to vector<64x384xf32>
    %9 = arith.addf %6, %8 : vector<64x384xf32>
    %10 = vector.shape_cast %9 : vector<64x384xf32> to vector<8x8x384xf32>
    %c0_7 = arith.constant 0 : index
    %c0_8 = arith.constant 0 : index
    %c0_9 = arith.constant 0 : index
    %11 = vector.load %arg11[%c0_7, %c0_8, %c0_9] : memref<8x8x384xf32, #tpu.memory_space<vmem>>, vector<8x8x384xf32>
    tpu.vector_store %arg11[%c0_7, %c0_8, %c0_9], %10 {strides = array<i32>} : memref<8x8x384xf32, #tpu.memory_space<vmem>>, vector<8x8x384xf32>,
    %c0_10 = arith.constant 0 : index
    %c0_11 = arith.constant 0 : index
    %12 = vector.load %arg5[%c0_10, %c0_11] : memref<128x384xf32, #tpu.memory_space<vmem>>, vector<128x384xf32>
    %c0_12 = arith.constant 0 : index
    %c0_13 = arith.constant 0 : index
    %13 = vector.load %arg6[%c0_12, %c0_13] : memref<1x128xf32, #tpu.memory_space<vmem>>, vector<1x128xf32>
    %14 = vector.shape_cast %13 : vector<1x128xf32> to vector<1x128xf32>
    %15 = vector.broadcast %14 : vector<1x128xf32> to vector<8x128xf32>
    %c0_14 = arith.constant 0 : index
    %c0_15 = arith.constant 0 : index
    %16 = vector.load %arg10[%c0_14, %c0_15] : memref<8x128xf32, #tpu.memory_space<vmem>>, vector<8x128xf32>
    %c0_i32_16 = arith.constant 0 : i32
    %cst_17 = arith.constant dense<0.000000e+00> : vector<8x384xf32>
    %17 = tpu.matmul %16, %12, %cst_17 {dimension_numbers = #tpu.dot_dimension_numbers<[1], [0], [0], [1], [0, 0, 1, 1], [], []>} : vector<8x128xf32>, vector<128x384xf32>, vector<8x384xf32> -> vector<8x384xf32>
    %18 = arith.index_cast %c0_i32_16 : i32 to index
    %c0_18 = arith.constant 0 : index
    %c0_19 = arith.constant 0 : index
    %19 = vector.load %arg11[%18, %c0_18, %c0_19] : memref<8x8x384xf32, #tpu.memory_space<vmem>>, vector<1x8x384xf32>
    %20 = vector.shape_cast %19 : vector<1x8x384xf32> to vector<8x384xf32>
    %21 = vector.extract_strided_slice %20 {offsets = [0, 0], sizes = [8, 128], strides = [1, 1]} : vector<8x384xf32> to vector<8x128xf32>
    %22 = vector.extract_strided_slice %17 {offsets = [0, 0], sizes = [8, 128], strides = [1, 1]} : vector<8x384xf32> to vector<8x128xf32>
    %23 = arith.addf %21, %22 : vector<8x128xf32>
    %24 = arith.negf %23 : vector<8x128xf32>
    %25 = math.exp %24 : vector<8x128xf32>
    %cst_20 = arith.constant 1.000000e+00 : f32
    %26 = vector.broadcast %cst_20 : f32 to vector<8x128xf32>
    %27 = arith.addf %26, %25 : vector<8x128xf32>
    %28 = arith.divf %26, %27 : vector<8x128xf32>
    %29 = vector.extract_strided_slice %20 {offsets = [0, 128], sizes = [8, 128], strides = [1, 1]} : vector<8x384xf32> to vector<8x128xf32>
    %30 = vector.extract_strided_slice %17 {offsets = [0, 128], sizes = [8, 128], strides = [1, 1]} : vector<8x384xf32> to vector<8x128xf32>
    %31 = arith.addf %29, %30 : vector<8x128xf32>
    %32 = arith.negf %31 : vector<8x128xf32>
    %33 = math.exp %32 : vector<8x128xf32>
    %cst_21 = arith.constant 1.000000e+00 : f32
    %34 = vector.broadcast %cst_21 : f32 to vector<8x128xf32>
    %35 = arith.addf %34, %33 : vector<8x128xf32>
    %36 = arith.divf %34, %35 : vector<8x128xf32>
    %37 = vector.extract_strided_slice %20 {offsets = [0, 256], sizes = [8, 128], strides = [1, 1]} : vector<8x384xf32> to vector<8x128xf32>
    %38 = vector.extract_strided_slice %17 {offsets = [0, 256], sizes = [8, 128], strides = [1, 1]} : vector<8x384xf32> to vector<8x128xf32>
    %39 = arith.addf %38, %15 : vector<8x128xf32>
    %40 = arith.mulf %28, %39 : vector<8x128xf32>
    %41 = arith.addf %37, %40 : vector<8x128xf32>
    %42 = math.tanh %41 : vector<8x128xf32>
    %cst_22 = arith.constant 1.000000e+00 : f32
    %43 = vector.broadcast %cst_22 : f32 to vector<8x128xf32>
    %44 = arith.subf %43, %36 : vector<8x128xf32>
    %45 = arith.mulf %44, %42 : vector<8x128xf32>
    %46 = arith.mulf %36, %16 : vector<8x128xf32>
    %47 = arith.addf %45, %46 : vector<8x128xf32>
    %c1_i32 = arith.constant 1 : i32
    %cst_23 = arith.constant dense<0.000000e+00> : vector<8x384xf32>
    %48 = tpu.matmul %47, %12, %cst_23 {dimension_numbers = #tpu.dot_dimension_numbers<[1], [0], [0], [1], [0, 0, 1, 1], [], []>} : vector<8x128xf32>, vector<128x384xf32>, vector<8x384xf32> -> vector<8x384xf32>
    %49 = arith.index_cast %c1_i32 : i32 to index
    %c0_24 = arith.constant 0 : index
    %c0_25 = arith.constant 0 : index
    %50 = vector.load %arg11[%49, %c0_24, %c0_25] : memref<8x8x384xf32, #tpu.memory_space<vmem>>, vector<1x8x384xf32>
    %51 = vector.shape_cast %50 : vector<1x8x384xf32> to vector<8x384xf32>
    %52 = vector.extract_strided_slice %51 {offsets = [0, 0], sizes = [8, 128], strides = [1, 1]} : vector<8x384xf32> to vector<8x128xf32>
    %53 = vector.extract_strided_slice %48 {offsets = [0, 0], sizes = [8, 128], strides = [1, 1]} : vector<8x384xf32> to vector<8x128xf32>
    %54 = arith.addf %52, %53 : vector<8x128xf32>
    %55 = arith.negf %54 : vector<8x128xf32>
    %56 = math.exp %55 : vector<8x128xf32>
    %cst_26 = arith.constant 1.000000e+00 : f32
    %57 = vector.broadcast %cst_26 : f32 to vector<8x128xf32>
    %58 = arith.addf %57, %56 : vector<8x128xf32>
    %59 = arith.divf %57, %58 : vector<8x128xf32>
    %60 = vector.extract_strided_slice %51 {offsets = [0, 128], sizes = [8, 128], strides = [1, 1]} : vector<8x384xf32> to vector<8x128xf32>
    %61 = vector.extract_strided_slice %48 {offsets = [0, 128], sizes = [8, 128], strides = [1, 1]} : vector<8x384xf32> to vector<8x128xf32>
    %62 = arith.addf %60, %61 : vector<8x128xf32>
    %63 = arith.negf %62 : vector<8x128xf32>
    %64 = math.exp %63 : vector<8x128xf32>
    %cst_27 = arith.constant 1.000000e+00 : f32
    %65 = vector.broadcast %cst_27 : f32 to vector<8x128xf32>
    %66 = arith.addf %65, %64 : vector<8x128xf32>
    %67 = arith.divf %65, %66 : vector<8x128xf32>
    %68 = vector.extract_strided_slice %51 {offsets = [0, 256], sizes = [8, 128], strides = [1, 1]} : vector<8x384xf32> to vector<8x128xf32>
    %69 = vector.extract_strided_slice %48 {offsets = [0, 256], sizes = [8, 128], strides = [1, 1]} : vector<8x384xf32> to vector<8x128xf32>
    %70 = arith.addf %69, %15 : vector<8x128xf32>
    %71 = arith.mulf %59, %70 : vector<8x128xf32>
    %72 = arith.addf %68, %71 : vector<8x128xf32>
    %73 = math.tanh %72 : vector<8x128xf32>
    %cst_28 = arith.constant 1.000000e+00 : f32
    %74 = vector.broadcast %cst_28 : f32 to vector<8x128xf32>
    %75 = arith.subf %74, %67 : vector<8x128xf32>
    %76 = arith.mulf %75, %73 : vector<8x128xf32>
    %77 = arith.mulf %67, %47 : vector<8x128xf32>
    %78 = arith.addf %76, %77 : vector<8x128xf32>
    %c2_i32 = arith.constant 2 : i32
    %cst_29 = arith.constant dense<0.000000e+00> : vector<8x384xf32>
    %79 = tpu.matmul %78, %12, %cst_29 {dimension_numbers = #tpu.dot_dimension_numbers<[1], [0], [0], [1], [0, 0, 1, 1], [], []>} : vector<8x128xf32>, vector<128x384xf32>, vector<8x384xf32> -> vector<8x384xf32>
    %80 = arith.index_cast %c2_i32 : i32 to index
    %c0_30 = arith.constant 0 : index
    %c0_31 = arith.constant 0 : index
    %81 = vector.load %arg11[%80, %c0_30, %c0_31] : memref<8x8x384xf32, #tpu.memory_space<vmem>>, vector<1x8x384xf32>
    %82 = vector.shape_cast %81 : vector<1x8x384xf32> to vector<8x384xf32>
    %83 = vector.extract_strided_slice %82 {offsets = [0, 0], sizes = [8, 128], strides = [1, 1]} : vector<8x384xf32> to vector<8x128xf32>
    %84 = vector.extract_strided_slice %79 {offsets = [0, 0], sizes = [8, 128], strides = [1, 1]} : vector<8x384xf32> to vector<8x128xf32>
    %85 = arith.addf %83, %84 : vector<8x128xf32>
    %86 = arith.negf %85 : vector<8x128xf32>
    %87 = math.exp %86 : vector<8x128xf32>
    %cst_32 = arith.constant 1.000000e+00 : f32
    %88 = vector.broadcast %cst_32 : f32 to vector<8x128xf32>
    %89 = arith.addf %88, %87 : vector<8x128xf32>
    %90 = arith.divf %88, %89 : vector<8x128xf32>
    %91 = vector.extract_strided_slice %82 {offsets = [0, 128], sizes = [8, 128], strides = [1, 1]} : vector<8x384xf32> to vector<8x128xf32>
    %92 = vector.extract_strided_slice %79 {offsets = [0, 128], sizes = [8, 128], strides = [1, 1]} : vector<8x384xf32> to vector<8x128xf32>
    %93 = arith.addf %91, %92 : vector<8x128xf32>
    %94 = arith.negf %93 : vector<8x128xf32>
    %95 = math.exp %94 : vector<8x128xf32>
    %cst_33 = arith.constant 1.000000e+00 : f32
    %96 = vector.broadcast %cst_33 : f32 to vector<8x128xf32>
    %97 = arith.addf %96, %95 : vector<8x128xf32>
    %98 = arith.divf %96, %97 : vector<8x128xf32>
    %99 = vector.extract_strided_slice %82 {offsets = [0, 256], sizes = [8, 128], strides = [1, 1]} : vector<8x384xf32> to vector<8x128xf32>
    %100 = vector.extract_strided_slice %79 {offsets = [0, 256], sizes = [8, 128], strides = [1, 1]} : vector<8x384xf32> to vector<8x128xf32>
    %101 = arith.addf %100, %15 : vector<8x128xf32>
    %102 = arith.mulf %90, %101 : vector<8x128xf32>
    %103 = arith.addf %99, %102 : vector<8x128xf32>
    %104 = math.tanh %103 : vector<8x128xf32>
    %cst_34 = arith.constant 1.000000e+00 : f32
    %105 = vector.broadcast %cst_34 : f32 to vector<8x128xf32>
    %106 = arith.subf %105, %98 : vector<8x128xf32>
    %107 = arith.mulf %106, %104 : vector<8x128xf32>
    %108 = arith.mulf %98, %78 : vector<8x128xf32>
    %109 = arith.addf %107, %108 : vector<8x128xf32>
    %c3_i32 = arith.constant 3 : i32
    %cst_35 = arith.constant dense<0.000000e+00> : vector<8x384xf32>
    %110 = tpu.matmul %109, %12, %cst_35 {dimension_numbers = #tpu.dot_dimension_numbers<[1], [0], [0], [1], [0, 0, 1, 1], [], []>} : vector<8x128xf32>, vector<128x384xf32>, vector<8x384xf32> -> vector<8x384xf32>
    %111 = arith.index_cast %c3_i32 : i32 to index
    %c0_36 = arith.constant 0 : index
    %c0_37 = arith.constant 0 : index
    %112 = vector.load %arg11[%111, %c0_36, %c0_37] : memref<8x8x384xf32, #tpu.memory_space<vmem>>, vector<1x8x384xf32>
    %113 = vector.shape_cast %112 : vector<1x8x384xf32> to vector<8x384xf32>
    %114 = vector.extract_strided_slice %113 {offsets = [0, 0], sizes = [8, 128], strides = [1, 1]} : vector<8x384xf32> to vector<8x128xf32>
    %115 = vector.extract_strided_slice %110 {offsets = [0, 0], sizes = [8, 128], strides = [1, 1]} : vector<8x384xf32> to vector<8x128xf32>
    %116 = arith.addf %114, %115 : vector<8x128xf32>
    %117 = arith.negf %116 : vector<8x128xf32>
    %118 = math.exp %117 : vector<8x128xf32>
    %cst_38 = arith.constant 1.000000e+00 : f32
    %119 = vector.broadcast %cst_38 : f32 to vector<8x128xf32>
    %120 = arith.addf %119, %118 : vector<8x128xf32>
    %121 = arith.divf %119, %120 : vector<8x128xf32>
    %122 = vector.extract_strided_slice %113 {offsets = [0, 128], sizes = [8, 128], strides = [1, 1]} : vector<8x384xf32> to vector<8x128xf32>
    %123 = vector.extract_strided_slice %110 {offsets = [0, 128], sizes = [8, 128], strides = [1, 1]} : vector<8x384xf32> to vector<8x128xf32>
    %124 = arith.addf %122, %123 : vector<8x128xf32>
    %125 = arith.negf %124 : vector<8x128xf32>
    %126 = math.exp %125 : vector<8x128xf32>
    %cst_39 = arith.constant 1.000000e+00 : f32
    %127 = vector.broadcast %cst_39 : f32 to vector<8x128xf32>
    %128 = arith.addf %127, %126 : vector<8x128xf32>
    %129 = arith.divf %127, %128 : vector<8x128xf32>
    %130 = vector.extract_strided_slice %113 {offsets = [0, 256], sizes = [8, 128], strides = [1, 1]} : vector<8x384xf32> to vector<8x128xf32>
    %131 = vector.extract_strided_slice %110 {offsets = [0, 256], sizes = [8, 128], strides = [1, 1]} : vector<8x384xf32> to vector<8x128xf32>
    %132 = arith.addf %131, %15 : vector<8x128xf32>
    %133 = arith.mulf %121, %132 : vector<8x128xf32>
    %134 = arith.addf %130, %133 : vector<8x128xf32>
    %135 = math.tanh %134 : vector<8x128xf32>
    %cst_40 = arith.constant 1.000000e+00 : f32
    %136 = vector.broadcast %cst_40 : f32 to vector<8x128xf32>
    %137 = arith.subf %136, %129 : vector<8x128xf32>
    %138 = arith.mulf %137, %135 : vector<8x128xf32>
    %139 = arith.mulf %129, %109 : vector<8x128xf32>
    %140 = arith.addf %138, %139 : vector<8x128xf32>
    %c4_i32 = arith.constant 4 : i32
    %cst_41 = arith.constant dense<0.000000e+00> : vector<8x384xf32>
    %141 = tpu.matmul %140, %12, %cst_41 {dimension_numbers = #tpu.dot_dimension_numbers<[1], [0], [0], [1], [0, 0, 1, 1], [], []>} : vector<8x128xf32>, vector<128x384xf32>, vector<8x384xf32> -> vector<8x384xf32>
    %142 = arith.index_cast %c4_i32 : i32 to index
    %c0_42 = arith.constant 0 : index
    %c0_43 = arith.constant 0 : index
    %143 = vector.load %arg11[%142, %c0_42, %c0_43] : memref<8x8x384xf32, #tpu.memory_space<vmem>>, vector<1x8x384xf32>
    %144 = vector.shape_cast %143 : vector<1x8x384xf32> to vector<8x384xf32>
    %145 = vector.extract_strided_slice %144 {offsets = [0, 0], sizes = [8, 128], strides = [1, 1]} : vector<8x384xf32> to vector<8x128xf32>
    %146 = vector.extract_strided_slice %141 {offsets = [0, 0], sizes = [8, 128], strides = [1, 1]} : vector<8x384xf32> to vector<8x128xf32>
    %147 = arith.addf %145, %146 : vector<8x128xf32>
    %148 = arith.negf %147 : vector<8x128xf32>
    %149 = math.exp %148 : vector<8x128xf32>
    %cst_44 = arith.constant 1.000000e+00 : f32
    %150 = vector.broadcast %cst_44 : f32 to vector<8x128xf32>
    %151 = arith.addf %150, %149 : vector<8x128xf32>
    %152 = arith.divf %150, %151 : vector<8x128xf32>
    %153 = vector.extract_strided_slice %144 {offsets = [0, 128], sizes = [8, 128], strides = [1, 1]} : vector<8x384xf32> to vector<8x128xf32>
    %154 = vector.extract_strided_slice %141 {offsets = [0, 128], sizes = [8, 128], strides = [1, 1]} : vector<8x384xf32> to vector<8x128xf32>
    %155 = arith.addf %153, %154 : vector<8x128xf32>
    %156 = arith.negf %155 : vector<8x128xf32>
    %157 = math.exp %156 : vector<8x128xf32>
    %cst_45 = arith.constant 1.000000e+00 : f32
    %158 = vector.broadcast %cst_45 : f32 to vector<8x128xf32>
    %159 = arith.addf %158, %157 : vector<8x128xf32>
    %160 = arith.divf %158, %159 : vector<8x128xf32>
    %161 = vector.extract_strided_slice %144 {offsets = [0, 256], sizes = [8, 128], strides = [1, 1]} : vector<8x384xf32> to vector<8x128xf32>
    %162 = vector.extract_strided_slice %141 {offsets = [0, 256], sizes = [8, 128], strides = [1, 1]} : vector<8x384xf32> to vector<8x128xf32>
    %163 = arith.addf %162, %15 : vector<8x128xf32>
    %164 = arith.mulf %152, %163 : vector<8x128xf32>
    %165 = arith.addf %161, %164 : vector<8x128xf32>
    %166 = math.tanh %165 : vector<8x128xf32>
    %cst_46 = arith.constant 1.000000e+00 : f32
    %167 = vector.broadcast %cst_46 : f32 to vector<8x128xf32>
    %168 = arith.subf %167, %160 : vector<8x128xf32>
    %169 = arith.mulf %168, %166 : vector<8x128xf32>
    %170 = arith.mulf %160, %140 : vector<8x128xf32>
    %171 = arith.addf %169, %170 : vector<8x128xf32>
    %c5_i32 = arith.constant 5 : i32
    %cst_47 = arith.constant dense<0.000000e+00> : vector<8x384xf32>
    %172 = tpu.matmul %171, %12, %cst_47 {dimension_numbers = #tpu.dot_dimension_numbers<[1], [0], [0], [1], [0, 0, 1, 1], [], []>} : vector<8x128xf32>, vector<128x384xf32>, vector<8x384xf32> -> vector<8x384xf32>
    %173 = arith.index_cast %c5_i32 : i32 to index
    %c0_48 = arith.constant 0 : index
    %c0_49 = arith.constant 0 : index
    %174 = vector.load %arg11[%173, %c0_48, %c0_49] : memref<8x8x384xf32, #tpu.memory_space<vmem>>, vector<1x8x384xf32>
    %175 = vector.shape_cast %174 : vector<1x8x384xf32> to vector<8x384xf32>
    %176 = vector.extract_strided_slice %175 {offsets = [0, 0], sizes = [8, 128], strides = [1, 1]} : vector<8x384xf32> to vector<8x128xf32>
    %177 = vector.extract_strided_slice %172 {offsets = [0, 0], sizes = [8, 128], strides = [1, 1]} : vector<8x384xf32> to vector<8x128xf32>
    %178 = arith.addf %176, %177 : vector<8x128xf32>
    %179 = arith.negf %178 : vector<8x128xf32>
    %180 = math.exp %179 : vector<8x128xf32>
    %cst_50 = arith.constant 1.000000e+00 : f32
    %181 = vector.broadcast %cst_50 : f32 to vector<8x128xf32>
    %182 = arith.addf %181, %180 : vector<8x128xf32>
    %183 = arith.divf %181, %182 : vector<8x128xf32>
    %184 = vector.extract_strided_slice %175 {offsets = [0, 128], sizes = [8, 128], strides = [1, 1]} : vector<8x384xf32> to vector<8x128xf32>
    %185 = vector.extract_strided_slice %172 {offsets = [0, 128], sizes = [8, 128], strides = [1, 1]} : vector<8x384xf32> to vector<8x128xf32>
    %186 = arith.addf %184, %185 : vector<8x128xf32>
    %187 = arith.negf %186 : vector<8x128xf32>
    %188 = math.exp %187 : vector<8x128xf32>
    %cst_51 = arith.constant 1.000000e+00 : f32
    %189 = vector.broadcast %cst_51 : f32 to vector<8x128xf32>
    %190 = arith.addf %189, %188 : vector<8x128xf32>
    %191 = arith.divf %189, %190 : vector<8x128xf32>
    %192 = vector.extract_strided_slice %175 {offsets = [0, 256], sizes = [8, 128], strides = [1, 1]} : vector<8x384xf32> to vector<8x128xf32>
    %193 = vector.extract_strided_slice %172 {offsets = [0, 256], sizes = [8, 128], strides = [1, 1]} : vector<8x384xf32> to vector<8x128xf32>
    %194 = arith.addf %193, %15 : vector<8x128xf32>
    %195 = arith.mulf %183, %194 : vector<8x128xf32>
    %196 = arith.addf %192, %195 : vector<8x128xf32>
    %197 = math.tanh %196 : vector<8x128xf32>
    %cst_52 = arith.constant 1.000000e+00 : f32
    %198 = vector.broadcast %cst_52 : f32 to vector<8x128xf32>
    %199 = arith.subf %198, %191 : vector<8x128xf32>
    %200 = arith.mulf %199, %197 : vector<8x128xf32>
    %201 = arith.mulf %191, %171 : vector<8x128xf32>
    %202 = arith.addf %200, %201 : vector<8x128xf32>
    %c6_i32 = arith.constant 6 : i32
    %cst_53 = arith.constant dense<0.000000e+00> : vector<8x384xf32>
    %203 = tpu.matmul %202, %12, %cst_53 {dimension_numbers = #tpu.dot_dimension_numbers<[1], [0], [0], [1], [0, 0, 1, 1], [], []>} : vector<8x128xf32>, vector<128x384xf32>, vector<8x384xf32> -> vector<8x384xf32>
    %204 = arith.index_cast %c6_i32 : i32 to index
    %c0_54 = arith.constant 0 : index
    %c0_55 = arith.constant 0 : index
    %205 = vector.load %arg11[%204, %c0_54, %c0_55] : memref<8x8x384xf32, #tpu.memory_space<vmem>>, vector<1x8x384xf32>
    %206 = vector.shape_cast %205 : vector<1x8x384xf32> to vector<8x384xf32>
    %207 = vector.extract_strided_slice %206 {offsets = [0, 0], sizes = [8, 128], strides = [1, 1]} : vector<8x384xf32> to vector<8x128xf32>
    %208 = vector.extract_strided_slice %203 {offsets = [0, 0], sizes = [8, 128], strides = [1, 1]} : vector<8x384xf32> to vector<8x128xf32>
    %209 = arith.addf %207, %208 : vector<8x128xf32>
    %210 = arith.negf %209 : vector<8x128xf32>
    %211 = math.exp %210 : vector<8x128xf32>
    %cst_56 = arith.constant 1.000000e+00 : f32
    %212 = vector.broadcast %cst_56 : f32 to vector<8x128xf32>
    %213 = arith.addf %212, %211 : vector<8x128xf32>
    %214 = arith.divf %212, %213 : vector<8x128xf32>
    %215 = vector.extract_strided_slice %206 {offsets = [0, 128], sizes = [8, 128], strides = [1, 1]} : vector<8x384xf32> to vector<8x128xf32>
    %216 = vector.extract_strided_slice %203 {offsets = [0, 128], sizes = [8, 128], strides = [1, 1]} : vector<8x384xf32> to vector<8x128xf32>
    %217 = arith.addf %215, %216 : vector<8x128xf32>
    %218 = arith.negf %217 : vector<8x128xf32>
    %219 = math.exp %218 : vector<8x128xf32>
    %cst_57 = arith.constant 1.000000e+00 : f32
    %220 = vector.broadcast %cst_57 : f32 to vector<8x128xf32>
    %221 = arith.addf %220, %219 : vector<8x128xf32>
    %222 = arith.divf %220, %221 : vector<8x128xf32>
    %223 = vector.extract_strided_slice %206 {offsets = [0, 256], sizes = [8, 128], strides = [1, 1]} : vector<8x384xf32> to vector<8x128xf32>
    %224 = vector.extract_strided_slice %203 {offsets = [0, 256], sizes = [8, 128], strides = [1, 1]} : vector<8x384xf32> to vector<8x128xf32>
    %225 = arith.addf %224, %15 : vector<8x128xf32>
    %226 = arith.mulf %214, %225 : vector<8x128xf32>
    %227 = arith.addf %223, %226 : vector<8x128xf32>
    %228 = math.tanh %227 : vector<8x128xf32>
    %cst_58 = arith.constant 1.000000e+00 : f32
    %229 = vector.broadcast %cst_58 : f32 to vector<8x128xf32>
    %230 = arith.subf %229, %222 : vector<8x128xf32>
    %231 = arith.mulf %230, %228 : vector<8x128xf32>
    %232 = arith.mulf %222, %202 : vector<8x128xf32>
    %233 = arith.addf %231, %232 : vector<8x128xf32>
    %c7_i32 = arith.constant 7 : i32
    %cst_59 = arith.constant dense<0.000000e+00> : vector<8x384xf32>
    %234 = tpu.matmul %233, %12, %cst_59 {dimension_numbers = #tpu.dot_dimension_numbers<[1], [0], [0], [1], [0, 0, 1, 1], [], []>} : vector<8x128xf32>, vector<128x384xf32>, vector<8x384xf32> -> vector<8x384xf32>
    %235 = arith.index_cast %c7_i32 : i32 to index
    %c0_60 = arith.constant 0 : index
    %c0_61 = arith.constant 0 : index
    %236 = vector.load %arg11[%235, %c0_60, %c0_61] : memref<8x8x384xf32, #tpu.memory_space<vmem>>, vector<1x8x384xf32>
    %237 = vector.shape_cast %236 : vector<1x8x384xf32> to vector<8x384xf32>
    %238 = vector.extract_strided_slice %237 {offsets = [0, 0], sizes = [8, 128], strides = [1, 1]} : vector<8x384xf32> to vector<8x128xf32>
    %239 = vector.extract_strided_slice %234 {offsets = [0, 0], sizes = [8, 128], strides = [1, 1]} : vector<8x384xf32> to vector<8x128xf32>
    %240 = arith.addf %238, %239 : vector<8x128xf32>
    %241 = arith.negf %240 : vector<8x128xf32>
    %242 = math.exp %241 : vector<8x128xf32>
    %cst_62 = arith.constant 1.000000e+00 : f32
    %243 = vector.broadcast %cst_62 : f32 to vector<8x128xf32>
    %244 = arith.addf %243, %242 : vector<8x128xf32>
    %245 = arith.divf %243, %244 : vector<8x128xf32>
    %246 = vector.extract_strided_slice %237 {offsets = [0, 128], sizes = [8, 128], strides = [1, 1]} : vector<8x384xf32> to vector<8x128xf32>
    %247 = vector.extract_strided_slice %234 {offsets = [0, 128], sizes = [8, 128], strides = [1, 1]} : vector<8x384xf32> to vector<8x128xf32>
    %248 = arith.addf %246, %247 : vector<8x128xf32>
    %249 = arith.negf %248 : vector<8x128xf32>
    %250 = math.exp %249 : vector<8x128xf32>
    %cst_63 = arith.constant 1.000000e+00 : f32
    %251 = vector.broadcast %cst_63 : f32 to vector<8x128xf32>
    %252 = arith.addf %251, %250 : vector<8x128xf32>
    %253 = arith.divf %251, %252 : vector<8x128xf32>
    %254 = vector.extract_strided_slice %237 {offsets = [0, 256], sizes = [8, 128], strides = [1, 1]} : vector<8x384xf32> to vector<8x128xf32>
    %255 = vector.extract_strided_slice %234 {offsets = [0, 256], sizes = [8, 128], strides = [1, 1]} : vector<8x384xf32> to vector<8x128xf32>
    %256 = arith.addf %255, %15 : vector<8x128xf32>
    %257 = arith.mulf %245, %256 : vector<8x128xf32>
    %258 = arith.addf %254, %257 : vector<8x128xf32>
    %259 = math.tanh %258 : vector<8x128xf32>
    %cst_64 = arith.constant 1.000000e+00 : f32
    %260 = vector.broadcast %cst_64 : f32 to vector<8x128xf32>
    %261 = arith.subf %260, %253 : vector<8x128xf32>
    %262 = arith.mulf %261, %259 : vector<8x128xf32>
    %263 = arith.mulf %253, %233 : vector<8x128xf32>
    %264 = arith.addf %262, %263 : vector<8x128xf32>
    %c8_i32 = arith.constant 8 : i32
    %c0_65 = arith.constant 0 : index
    %c0_66 = arith.constant 0 : index
    %265 = vector.load %arg10[%c0_65, %c0_66] : memref<8x128xf32, #tpu.memory_space<vmem>>, vector<8x128xf32>
    tpu.vector_store %arg10[%c0_65, %c0_66], %264 {strides = array<i32>} : memref<8x128xf32, #tpu.memory_space<vmem>>, vector<8x128xf32>,
    %c0_i32_67 = arith.constant 0 : i32
    %266 = arith.cmpi eq, %arg1, %c0_i32_67 : i32
    %267 = arith.extui %266 : i1 to i32
    %c0_i32_68 = arith.constant 0 : i32
    %268 = arith.cmpi ne, %267, %c0_i32_68 : i32
    scf.if %268 {
      %c0_69 = arith.constant 0 : index
      %c0_70 = arith.constant 0 : index
      %269 = vector.load %arg7[%c0_69, %c0_70] : memref<128x128xf32, #tpu.memory_space<vmem>>, vector<128x128xf32>
      %cst_71 = arith.constant dense<0.000000e+00> : vector<8x128xf32>
      %270 = tpu.matmul %264, %269, %cst_71 {dimension_numbers = #tpu.dot_dimension_numbers<[1], [0], [0], [1], [0, 0, 1, 1], [], []>} : vector<8x128xf32>, vector<128x128xf32>, vector<8x128xf32> -> vector<8x128xf32>
      %c0_72 = arith.constant 0 : index
      %c0_73 = arith.constant 0 : index
      %271 = vector.load %arg8[%c0_72, %c0_73] : memref<1x128xf32, #tpu.memory_space<vmem>>, vector<1x128xf32>
      %272 = vector.broadcast %271 : vector<1x128xf32> to vector<8x128xf32>
      %273 = arith.addf %270, %272 : vector<8x128xf32>
      %c0_74 = arith.constant 0 : index
      %c0_75 = arith.constant 0 : index
      %274 = vector.load %arg9[%c0_74, %c0_75] : memref<8x128xf32, #tpu.memory_space<vmem>>, vector<8x128xf32>
      tpu.vector_store %arg9[%c0_74, %c0_75], %273 {strides = array<i32>} : memref<8x128xf32, #tpu.memory_space<vmem>>, vector<8x128xf32>,
    } else {
    }
    return
  }
  func.func @transform_0(%arg0: i32, %arg1: i32) -> (i32, i32, i32) {
    %c0_i32 = arith.constant 0 : i32
    %c0_i32_0 = arith.constant 0 : i32
    return %arg1, %arg0, %c0_i32 : i32, i32, i32
  }
  func.func @transform_1(%arg0: i32, %arg1: i32) -> (i32, i32) {
    %c0_i32 = arith.constant 0 : i32
    %c0_i32_0 = arith.constant 0 : i32
    %c0_i32_1 = arith.constant 0 : i32
    return %c0_i32, %c0_i32_0 : i32, i32
  }
  func.func @transform_2(%arg0: i32, %arg1: i32) -> (i32, i32) {
    %c0_i32 = arith.constant 0 : i32
    %c0_i32_0 = arith.constant 0 : i32
    %c0_i32_1 = arith.constant 0 : i32
    return %c0_i32, %c0_i32_0 : i32, i32
  }
  func.func @transform_3(%arg0: i32, %arg1: i32) -> (i32, i32) {
    %c0_i32 = arith.constant 0 : i32
    %c0_i32_0 = arith.constant 0 : i32
    %c0_i32_1 = arith.constant 0 : i32
    return %c0_i32, %c0_i32_0 : i32, i32
  }
  func.func @transform_4(%arg0: i32, %arg1: i32) -> (i32, i32) {
    %c0_i32 = arith.constant 0 : i32
    %c0_i32_0 = arith.constant 0 : i32
    %c0_i32_1 = arith.constant 0 : i32
    return %c0_i32, %c0_i32_0 : i32, i32
  }
  func.func @transform_5(%arg0: i32, %arg1: i32) -> (i32, i32) {
    %c0_i32 = arith.constant 0 : i32
    %c0_i32_0 = arith.constant 0 : i32
    %c0_i32_1 = arith.constant 0 : i32
    return %c0_i32, %c0_i32_0 : i32, i32
  }
  func.func @transform_6(%arg0: i32, %arg1: i32) -> (i32, i32) {
    %c0_i32 = arith.constant 0 : i32
    %c0_i32_0 = arith.constant 0 : i32
    %c0_i32_1 = arith.constant 0 : i32
    return %c0_i32, %c0_i32_0 : i32, i32
  }
  func.func @transform_7(%arg0: i32, %arg1: i32) -> (i32, i32) {
    %c0_i32 = arith.constant 0 : i32
    %c0_i32_0 = arith.constant 0 : i32
    return %arg0, %c0_i32 : i32, i32
  }
}

</mosaic_0001>

<bundles_post_ra>
// kernel: tpu_custom_call.1
= control target key start
LH: loop header
LB: loop body
LE: loop exit
PB: predicated region body
PF: predicated region fallthrough
CT: control target
= control target key end

     0   :  { %12 = vsyncpa [#allocation5], 0  ;;  %s3788_s0 = inlined_call_operand.hbm [shape: f32[8,8,128], index: 0, kind: input, shape index: {}]   ;;  %s3789_s1 = inlined_call_operand.hbm [shape: f32[128,384], index: 1, kind: input, shape index: {}]   ;;  %s3790_s2 = inlined_call_operand.vmem [shape: f32[1,384], index: 2, kind: input, shape index: {}]   ;;  %s3791_s3 = inlined_call_operand.hbm [shape: f32[128,384], index: 3, kind: input, shape index: {}]   ;;  %s3792_s4 = inlined_call_operand.vmem [shape: f32[1,128], index: 4, kind: input, shape index: {}]   ;;  %s3793_s5 = inlined_call_operand.hbm [shape: f32[128,128], index: 5, kind: input, shape index: {}]   ;;  %s3794_s6 = inlined_call_operand.vmem [shape: f32[1,128], index: 6, kind: input, shape index: {}]   ;;  %s3795_s7 = inlined_call_operand.hbm [shape: f32[8,128], index: 7, kind: output, shape index: {}]  }
   0x1   :  { %13 = vsyncpa [#allocation8], 0 }
   0x2   :  { %14 = vsyncpa [#allocation11], 0 }
   0x3   :  { %15 = vsyncpa [#allocation6], 0  ;;  %s3240_s24 = smov [#allocation7]   ;;  %s3122_s28 = scalar_lea.hbm %s3789_s1, 6144 }
   0x4   :  { %s33_s25 = sshll.u32 %s3240_s24, 4  ;;  %p3123_p0 = scmp.ne.s32.totalorder %s3789_s1, %s3122_s28  ;;  %s34_s25 = int_to_ptr.vmem [resolvable:$true] %s33_s25 }
   0x5   :  { %p3126_p1 = scmp.lt.u32.totalorder %s3122_s28, %s3789_s1 }
   0x7   :  { %p3128_p2 = pnand %p3126_p1, %p3123_p0 }
   0x9   :  { %3131 = shalt.err (!%p3128_p2)
}
   0xa   :  { %s3132_s10 = scalar_lea.vmem %s34_s25, 6144  ;;  %p3137_p4 = scmp.lt.s32.totalorder %s34_s25, %s34_s25 }
   0xb   :  { %p3133_p3 = scmp.ne.s32.totalorder %s34_s25, %s3132_s10  ;;  %p3138_p5 = scmp.lt.s32.totalorder %s3132_s10, %s3132_s10 }
   0xd   :  { %p3139_p6 = por %p3138_p5, %p3137_p4 }
   0xf   :  { %p3140_p7 = pnand %p3139_p6, %p3133_p3 }
  0x11   :  { %3143 = shalt.err (!%p3140_p7)
}
  0x12   :  { %s3241_s11 = smov 384   ;;  %s3242_s12 = smov 24  }
  0x13   :  { %39 = dma.hbm_to_vmem [thread:$0]  %s3789_s1, 6144, %s34_s25, [#allocation8], %s3241_s11, %s3241_s11, %s3242_s12  }
  0x14   :  { %s3243_s15 = smov [#allocation4]   ;;  %s3144_s19 = scalar_lea.hbm %s3788_s0, 1024 }
  0x15   :  { %s21_s16 = sshll.u32 %s3243_s15, 4  ;;  %p3145_p8 = scmp.ne.s32.totalorder %s3788_s0, %s3144_s19  ;;  %s22_s16 = int_to_ptr.vmem [resolvable:$true] %s21_s16 }
  0x16   :  { %p3148_p9 = scmp.lt.u32.totalorder %s3144_s19, %s3788_s0 }
  0x18   :  { %p3150_p10 = pnand %p3148_p9, %p3145_p8 }
  0x1a   :  { %3153 = shalt.err (!%p3150_p10)
}
  0x1b   :  { %s3154_s24 = scalar_lea.vmem %s22_s16, 1024  ;;  %p3159_p12 = scmp.lt.s32.totalorder %s22_s16, %s22_s16 }
  0x1c   :  { %p3155_p11 = scmp.ne.s32.totalorder %s22_s16, %s3154_s24  ;;  %p3160_p13 = scmp.lt.s32.totalorder %s3154_s24, %s3154_s24 }
  0x1e   :  { %p3161_p0 = por %p3160_p13, %p3159_p12 }
  0x20   :  { %p3162_p1 = pnand %p3161_p0, %p3155_p11 }
  0x22   :  { %3165 = shalt.err (!%p3162_p1)
}
  0x23   :  { %s3244_s1 = smov 128   ;;  %s3245_s25 = smov 8  }
  0x24   :  { %27 = dma.hbm_to_vmem [thread:$0]  %s3788_s0, 1024, %s22_s16, [#allocation5], %s3244_s1, %s3244_s1, %s3245_s25  }
  0x25   :  { %s3246_s28 = smov [#allocation9]   ;;  %s3247_s30 = smov [#allocation10]  }
  0x26   :  { %s47_s29 = sshll.u32 %s3246_s28, 4  ;;  %s61_s8 = sshll.u32 %s3247_s30, 4  ;;  %s48_s29 = int_to_ptr.vmem [resolvable:$true] %s47_s29  ;;  %s3322_s8 = int_to_ptr.vmem [resolvable:$true] %s61_s8 }
  0x27   :  { %s3166_s13 = scalar_lea.hbm %s3791_s3, 6144 }
  0x28   :  { %p3167_p2 = scmp.ne.s32.totalorder %s3791_s3, %s3166_s13  ;;  %p3170_p3 = scmp.lt.u32.totalorder %s3166_s13, %s3791_s3 }
  0x2a   :  { %p3172_p4 = pnand %p3170_p3, %p3167_p2 }
  0x2c   :  { %3175 = shalt.err (!%p3172_p4)
}
  0x2d   :  { %s3176_s0 = scalar_lea.vmem %s48_s29, 6144  ;;  %p3181_p6 = scmp.lt.s32.totalorder %s48_s29, %s48_s29 }
  0x2e   :  { %p3177_p5 = scmp.ne.s32.totalorder %s48_s29, %s3176_s0  ;;  %p3182_p7 = scmp.lt.s32.totalorder %s3176_s0, %s3176_s0 }
  0x30   :  { %p3183_p8 = por %p3182_p7, %p3181_p6 }
  0x32   :  { %p3184_p9 = pnand %p3183_p8, %p3177_p5 }
  0x34   :  { %3187 = shalt.err (!%p3184_p9)
}
  0x35   :  { %53 = dma.hbm_to_vmem [thread:$0]  %s3791_s3, 6144, %s48_s29, [#allocation8], %s3241_s11, %s3241_s11, %s3242_s12  }
  0x36   :  { %s3188_s22 = scalar_lea.hbm %s3793_s5, 2048 }
  0x37   :  { %p3189_p10 = scmp.ne.s32.totalorder %s3793_s5, %s3188_s22  ;;  %p3192_p11 = scmp.lt.u32.totalorder %s3188_s22, %s3793_s5 }
  0x39   :  { %p3194_p12 = pnand %p3192_p11, %p3189_p10 }
  0x3b   :  { %3197 = shalt.err (!%p3194_p12)
}
  0x3c   :  { %s3198_s28 = scalar_lea.vmem %s3322_s8, 2048  ;;  %p3203_p0 = scmp.lt.s32.totalorder %s3322_s8, %s3322_s8 }
  0x3d   :  { %p3199_p13 = scmp.ne.s32.totalorder %s3322_s8, %s3198_s28  ;;  %p3204_p1 = scmp.lt.s32.totalorder %s3198_s28, %s3198_s28 }
  0x3f   :  { %p3205_p2 = por %p3204_p1, %p3203_p0 }
  0x41   :  { %p3206_p3 = pnand %p3205_p2, %p3199_p13 }
  0x43   :  { %3209 = shalt.err (!%p3206_p3)
}
  0x44   :  { %67 = dma.hbm_to_vmem [thread:$0]  %s3793_s5, 2048, %s3322_s8, [#allocation11], %s3244_s1, %s3244_s1, %s3245_s25  }
  0x45   :  { %3232 = dma.done.wait [#allocation5], 1024  }
  0x46   :  { %3233 = vsyncadd [#allocation5], 4294966272 }
  0x47   :  { %3234 = dma.done.wait [#allocation8], 12288  }
  0x48   :  { %3235 = vsyncadd [#allocation8], 4294955008 }
  0x49   :  { %3236 = dma.done.wait [#allocation11], 2048  }
  0x4a   :  { %3237 = vsyncadd [#allocation11], 4294965248  ;;  %v3248_v0 = vmov 0.0   ;;  %v96_v1 = vld [vmem:[#allocation7 + $0x8] sm:$0xff]  ;;  %v99_v2 = vld [vmem:[#allocation7 + $0x20] sm:$0xff]  ;;  %vm3250_vm0 = vmmov 0  }
  0x4b   :  { %224 = vmatprep.mubr.f32.mxu0 %v3248_v0  ;;  %v95_v3 = vld [vmem:[#allocation7] sm:$0xff]  ;;  %v2462_v4 = vpack.c.bf16 %v99_v2, %v96_v1  ;;  %v98_v5 = vld [vmem:[#allocation7 + $0x18] sm:$0xff]  ;;  %v105_v7 = vld [vmem:[#allocation7 + $0x50] sm:$0xff]  ;;  %s3251_s29 = smov [#allocation12]  }
  0x4c   :  { %v102_v6 = vld [vmem:[#allocation7 + $0x38] sm:$0xff]  ;;  %v2464_v8 = vpack.c.bf16 %v98_v5, %v95_v3  ;;  %v101_v10 = vld [vmem:[#allocation7 + $0x30] sm:$0xff]  ;;  %v104_v11 = vld [vmem:[#allocation7 + $0x48] sm:$0xff]  ;;  %s1897_s30 = sshll.u32 %s3251_s29, 4  ;;  %s1898_s30 = int_to_ptr.vmem [resolvable:$true] %s1897_s30 }
  0x4d   :  { %v2466_v9 = vpack.c.bf16 %v105_v7, %v102_v6  ;;  %v108_v12 = vld [vmem:[#allocation7 + $0x68] sm:$0xff]  ;;  %2463 = vmatprep.subr.bf16.mxu0 %v2462_v4  ;;  %v111_v13 = vld [vmem:[#allocation7 + $0x80] sm:$0xff]  ;;  %v2468_v14 = vpack.c.bf16 %v104_v11, %v101_v10  ;;  %v110_v17 = vld [vmem:[#allocation7 + $0x78] sm:$0xff]  ;;  %s3210_s8 = scalar_lea.vmem %s1898_s30, 128  ;;  %p3215_p5 = scmp.lt.s32.totalorder %s1898_s30, %s1898_s30 }
  0x4e   :  { %2465 = vmatpush1.bf16.msra.mxu0 %v2464_v8  ;;  %v2470_v15 = vpack.c.bf16 %v111_v13, %v108_v12  ;;  %v107_v16 = vld [vmem:[#allocation7 + $0x60] sm:$0xff]  ;;  %v114_v18 = vld [vmem:[#allocation7 + $0x98] sm:$0xff]  ;;  %v117_v19 = vld [vmem:[#allocation7 + $0xb0] sm:$0xff]  ;;  %p3211_p4 = scmp.ne.s32.totalorder %s1898_s30, %s3210_s8  ;;  %p3216_p6 = scmp.lt.s32.totalorder %s3210_s8, %s3210_s8 }
  0x4f   :  { %2467 = vmatprep.subr.bf16.mxu0 %v2466_v9  ;;  %v2472_v20 = vpack.c.bf16 %v110_v17, %v107_v16  ;;  %v113_v21 = vld [vmem:[#allocation7 + $0x90] sm:$0xff]  ;;  %v2474_v22 = vpack.c.bf16 %v117_v19, %v114_v18  ;;  %v116_v23 = vld [vmem:[#allocation7 + $0xa8] sm:$0xff]  ;;  %v123_v27 = vld [vmem:[#allocation7 + $0xe0] sm:$0xff] }
  0x50   :  { %v97_v24 = vld [vmem:[#allocation7 + $0x10] sm:$0xff]  ;;  %v100_v25 = vld [vmem:[#allocation7 + $0x28] sm:$0xff]  ;;  %v103_v29 = vld [vmem:[#allocation7 + $0x40] sm:$0xff]  ;;  %v2476_v31 = vpack.c.bf16 %v116_v23, %v113_v21  ;;  %p3217_p7 = por %p3216_p6, %p3215_p5 }
  0x51   :  { %v120_v26 = vld [vmem:[#allocation7 + $0xc8] sm:$0xff]  ;;  %v2494_v28 = vpack.c.bf16 %v100_v25, %v97_v24  ;;  %v106_v30 = vld [vmem:[#allocation7 + $0x58] sm:$0xff]  ;;  %v119_v32 = vld [vmem:[#allocation7 + $0xc0] sm:$0xff] }
  0x52   :  { %2469 = vmatpush1.bf16.msra.mxu0 %v2468_v14  ;;  %v2498_v33 = vpack.c.bf16 %v106_v30, %v103_v29  ;;  %v2478_v34 = vpack.c.bf16 %v123_v27, %v120_v26  ;;  %v122_v35 = vld [vmem:[#allocation7 + $0xd8] sm:$0xff]  ;;  %v3360_v36 = vld [vmem:[#allocation4] sm:$0xff]  ;;  %v109_v37 = vld [vmem:[#allocation7 + $0x70] sm:$0xff]  ;;  %p3218_p8 = pnand %p3217_p7, %p3211_p4 }
  0x53   :  { %2471 = vmatprep.subr.bf16.mxu0 %v2470_v15  ;;  %2495 = vmatprep.subr.bf16.mxu1 %v2494_v28  ;;  %v126_v38 = vld [vmem:[#allocation7 + $0xf8] sm:$0xff]  ;;  %v129_v39 = vld [vmem:[#allocation7 + $0x110] sm:$0xff]  ;;  %v112_v40 = vld [vmem:[#allocation7 + $0x88] sm:$0xff]  ;;  %v2480_v42 = vpack.c.bf16 %v122_v35, %v119_v32 }
  0x54   :  { %2497 = vmatpush3.bf16.msra.mxu1 %v2494_v28  ;;  %2135 = vmatprep.mubr.f32.mxu1 %v3360_v36  ;;  %v2502_v41 = vpack.c.bf16 %v112_v40, %v109_v37  ;;  %v115_v43 = vld [vmem:[#allocation7 + $0xa0] sm:$0xff]  ;;  %v118_v44 = vld [vmem:[#allocation7 + $0xb8] sm:$0xff]  ;;  %v2482_v45 = vpack.c.bf16 %v129_v39, %v126_v38  ;;  %v125_v46 = vld [vmem:[#allocation7 + $0xf0] sm:$0xff]  ;;  %v3249_v40 = vmov 0.0|0.0  }
  0x55   :  { %2499 = vmatprep.subr.bf16.mxu1 %v2498_v33  ;;  %v128_v47 = vld [vmem:[#allocation7 + $0x108] sm:$0xff]  ;;  %v135_v49 = vld [vmem:[#allocation7 + $0x140] sm:$0xff]  ;;  %v2506_v50 = vpack.c.bf16 %v118_v44, %v115_v43  ;;  %v121_v51 = vld [vmem:[#allocation7 + $0xd0] sm:$0xff] }
  0x56   :  { %2473 = vmatpush1.bf16.msra.mxu0 %v2472_v20  ;;  %v132_v48 = vld [vmem:[#allocation7 + $0x128] sm:$0xff]  ;;  %v2484_v53 = vpack.c.bf16 %v128_v47, %v125_v46  ;;  %v131_v55 = vld [vmem:[#allocation7 + $0x120] sm:$0xff]  ;;  %v134_v56 = vld [vmem:[#allocation7 + $0x138] sm:$0xff] }
  0x57   :  { %2475 = vmatprep.subr.bf16.mxu0 %v2474_v22  ;;  %v124_v52 = vld [vmem:[#allocation7 + $0xe8] sm:$0xff]  ;;  %v2486_v54 = vpack.c.bf16 %v135_v49, %v132_v48  ;;  %v138_v57 = vld [vmem:[#allocation7 + $0x158] sm:$0xff]  ;;  %v141_v58 = vld [vmem:[#allocation7 + $0x170] sm:$0xff]  ;;  %v2488_v62 = vpack.c.bf16 %v134_v56, %v131_v55 }
  0x58   :  { %2501 = vmatpush3.bf16.msra.mxu1 %v2498_v33  ;;  %v2510_v59 = vpack.c.bf16 %v124_v52, %v121_v51  ;;  %v127_v60 = vld [vmem:[#allocation7 + $0x100] sm:$0xff]  ;;  %v130_v61 = vld [vmem:[#allocation7 + $0x118] sm:$0xff]  ;;  %v2490_v63 = vpack.c.bf16 %v141_v58, %v138_v57  ;;  %v137_v1 = vld [vmem:[#allocation7 + $0x150] sm:$0xff] }
  0x59   :  { %2503 = vmatprep.subr.bf16.mxu1 %v2502_v41  ;;  %v140_v2 = vld [vmem:[#allocation7 + $0x168] sm:$0xff]  ;;  %v406_v4 = vld [vmem:[#allocation9 + $0x20] sm:$0xff]  ;;  %v2514_v5 = vpack.c.bf16 %v130_v61, %v127_v60  ;;  %v133_v6 = vld [vmem:[#allocation7 + $0x130] sm:$0xff] }
  0x5a   :  { %2477 = vmatpush1.bf16.msra.mxu0 %v2476_v31  ;;  %v403_v3 = vld [vmem:[#allocation9 + $0x8] sm:$0xff]  ;;  %v2492_v8 = vpack.c.bf16 %v140_v2, %v137_v1  ;;  %v402_v10 = vld [vmem:[#allocation9] sm:$0xff]  ;;  %v405_v11 = vld [vmem:[#allocation9 + $0x18] sm:$0xff] }
  0x5b   :  { %2479 = vmatprep.subr.bf16.mxu0 %v2478_v34  ;;  %v136_v7 = vld [vmem:[#allocation7 + $0x148] sm:$0xff]  ;;  %v3363_v9 = vpack.c.bf16 %v406_v4, %v403_v3  ;;  %v409_v12 = vld [vmem:[#allocation9 + $0x38] sm:$0xff]  ;;  %v412_v13 = vld [vmem:[#allocation9 + $0x50] sm:$0xff]  ;;  %v3365_v17 = vpack.c.bf16 %v405_v11, %v402_v10 }
  0x5c   :  { %2505 = vmatpush3.bf16.msra.mxu1 %v2502_v41  ;;  %v2518_v14 = vpack.c.bf16 %v136_v7, %v133_v6  ;;  %v139_v15 = vld [vmem:[#allocation7 + $0x160] sm:$0xff]  ;;  %v142_v16 = vld [vmem:[#allocation7 + $0x178] sm:$0xff]  ;;  %v3368_v18 = vpack.c.bf16 %v412_v13, %v409_v12  ;;  %v408_v19 = vld [vmem:[#allocation9 + $0x30] sm:$0xff] }
  0x5d   :  { %2507 = vmatprep.subr.bf16.mxu1 %v2506_v50  ;;  %v411_v20 = vld [vmem:[#allocation9 + $0x48] sm:$0xff]  ;;  %v418_v22 = vld [vmem:[#allocation9 + $0x80] sm:$0xff]  ;;  %v2522_v23 = vpack.c.bf16 %v142_v16, %v139_v15  ;;  %v417_v28 = vld [vmem:[#allocation9 + $0x78] sm:$0xff] }
  0x5e   :  { %2481 = vmatpush1.bf16.msra.mxu0 %v2480_v42  ;;  %v415_v21 = vld [vmem:[#allocation9 + $0x68] sm:$0xff]  ;;  %v3373_v25 = vpack.c.bf16 %v411_v20, %v408_v19  ;;  %v414_v27 = vld [vmem:[#allocation9 + $0x60] sm:$0xff]  ;;  %v421_v29 = vld [vmem:[#allocation9 + $0x98] sm:$0xff] }
  0x5f   :  { %2483 = vmatprep.subr.bf16.mxu0 %v2482_v45  ;;  %v88_v24 = vld [vmem:[#allocation4 + $0x8] sm:$0xff]  ;;  %v3376_v26 = vpack.c.bf16 %v418_v22, %v415_v21  ;;  %v424_v30 = vld [vmem:[#allocation9 + $0xb0] sm:$0xff]  ;;  %v3380_v34 = vpack.c.bf16 %v417_v28, %v414_v27  ;;  %v430_v39 = vld [vmem:[#allocation9 + $0xe0] sm:$0xff] }
  0x60   :  { %2509 = vmatpush3.bf16.msra.mxu1 %v2506_v50  ;;  %v404_v31 = vld [vmem:[#allocation9 + $0x10] sm:$0xff]  ;;  %v407_v32 = vld [vmem:[#allocation9 + $0x28] sm:$0xff]  ;;  %v3383_v35 = vpack.c.bf16 %v424_v30, %v421_v29  ;;  %v410_v42 = vld [vmem:[#allocation9 + $0x40] sm:$0xff] }
  0x61   :  { %2511 = vmatprep.subr.bf16.mxu1 %v2510_v59  ;;  %v89_v33 = vld [vmem:[#allocation4 + $0x10] sm:$0xff]  ;;  %v423_v37 = vld [vmem:[#allocation9 + $0xa8] sm:$0xff]  ;;  %v3386_v41 = vpack.c.bf16 %v407_v32, %v404_v31  ;;  %v413_v43 = vld [vmem:[#allocation9 + $0x58] sm:$0xff] }
  0x62   :  { %2485 = vmatpush1.bf16.msra.mxu0 %v2484_v53  ;;  %v427_v38 = vld [vmem:[#allocation9 + $0xc8] sm:$0xff]  ;;  %v90_v44 = vld [vmem:[#allocation4 + $0x18] sm:$0xff]  ;;  %v426_v47 = vld [vmem:[#allocation9 + $0xc0] sm:$0xff]  ;;  %v3396_v51 = vpack.c.bf16 %v413_v43, %v410_v42 }
  0x63   :  { %2487 = vmatprep.subr.bf16.mxu0 %v2486_v54  ;;  %v3393_v46 = vpack.c.bf16 %v430_v39, %v427_v38  ;;  %v429_v48 = vld [vmem:[#allocation9 + $0xd8] sm:$0xff]  ;;  %v436_v50 = vld [vmem:[#allocation9 + $0x110] sm:$0xff]  ;;  %v419_v53 = vld [vmem:[#allocation9 + $0x88] sm:$0xff] }
  0x64   :  { %2513 = vmatpush3.bf16.msra.mxu1 %v2510_v59  ;;  %v433_v49 = vld [vmem:[#allocation9 + $0xf8] sm:$0xff]  ;;  %v416_v52 = vld [vmem:[#allocation9 + $0x70] sm:$0xff]  ;;  %v91_v54 = vld [vmem:[#allocation4 + $0x20] sm:$0xff]  ;;  %v3401_v55 = vpack.c.bf16 %v429_v48, %v426_v47 }
  0x65   :  { %2515 = vmatprep.subr.bf16.mxu1 %v2514_v5  ;;  %v3404_v56 = vpack.c.bf16 %v436_v50, %v433_v49  ;;  %v432_v57 = vld [vmem:[#allocation9 + $0xf0] sm:$0xff]  ;;  %v435_v58 = vld [vmem:[#allocation9 + $0x108] sm:$0xff]  ;;  %v442_v60 = vld [vmem:[#allocation9 + $0x140] sm:$0xff]  ;;  %v3407_v61 = vpack.c.bf16 %v419_v53, %v416_v52 }
  0x66   :  { %2489 = vmatpush1.bf16.msra.mxu0 %v2488_v62  ;;  %v439_v59 = vld [vmem:[#allocation9 + $0x128] sm:$0xff]  ;;  %v422_v62 = vld [vmem:[#allocation9 + $0xa0] sm:$0xff]  ;;  %v3412_v2 = vpack.c.bf16 %v435_v58, %v432_v57  ;;  %v93_v3 = vld [vmem:[#allocation4 + $0x30] sm:$0xff] }
  0x67   :  { %2491 = vmatprep.subr.bf16.mxu0 %v2490_v63  ;;  %v425_v63 = vld [vmem:[#allocation9 + $0xb8] sm:$0xff]  ;;  %v92_v1 = vld [vmem:[#allocation4 + $0x28] sm:$0xff]  ;;  %v3415_v4 = vpack.c.bf16 %v442_v60, %v439_v59  ;;  %v428_v11 = vld [vmem:[#allocation9 + $0xd0] sm:$0xff] }
  0x68   :  { %2517 = vmatpush3.bf16.msra.mxu1 %v2514_v5  ;;  %v438_v5 = vld [vmem:[#allocation9 + $0x120] sm:$0xff]  ;;  %v441_v6 = vld [vmem:[#allocation9 + $0x138] sm:$0xff]  ;;  %v3418_v10 = vpack.c.bf16 %v425_v63, %v422_v62  ;;  %v431_v12 = vld [vmem:[#allocation9 + $0xe8] sm:$0xff] }
  0x69   :  { %2519 = vmatprep.subr.bf16.mxu1 %v2518_v14  ;;  %v445_v7 = vld [vmem:[#allocation9 + $0x158] sm:$0xff]  ;;  %v3423_v13 = vpack.c.bf16 %v441_v6, %v438_v5  ;;  %v444_v16 = vld [vmem:[#allocation9 + $0x150] sm:$0xff]  ;;  %v447_v19 = vld [vmem:[#allocation9 + $0x168] sm:$0xff]  ;;  %v3429_v20 = vpack.c.bf16 %v431_v12, %v428_v11 }
  0x6a   :  { %2493 = vmatpush1.bf16.msra.mxu0 %v2492_v8  ;;  %v448_v8 = vld [vmem:[#allocation9 + $0x170] sm:$0xff]  ;;  %v434_v21 = vld [vmem:[#allocation9 + $0x100] sm:$0xff]  ;;  %v437_v22 = vld [vmem:[#allocation9 + $0x118] sm:$0xff] }
  0x6b   :  { %2527 = vmatprep.subr.bf16.mxu0 %v3363_v9  ;;  %v3426_v15 = vpack.c.bf16 %v448_v8, %v445_v7  ;;  %v440_v27 = vld [vmem:[#allocation9 + $0x130] sm:$0xff]  ;;  %v443_v28 = vld [vmem:[#allocation9 + $0x148] sm:$0xff]  ;;  %v446_v30 = vld [vmem:[#allocation9 + $0x160] sm:$0xff] }
  0x6c   :  { %2521 = vmatpush3.bf16.msra.mxu1 %v2518_v14  ;;  %v94_v14 = vld [vmem:[#allocation4 + $0x38] sm:$0xff]  ;;  %v3447_v29 = vpack.c.bf16 %v443_v28, %v440_v27  ;;  %v143_v38 = vld [vmem:[%s3790_s2] sm:$0x7] }
  0x6d   :  { %225 = vmatmul.mubr.f32.vlgmr.msra.gmra.mrb[0].mxu0 %v3360_v36  ;;  %2523 = vmatprep.subr.bf16.mxu1 %v2522_v23  ;;  %v420_v36 = vld [vmem:[#allocation9 + $0x90] sm:$0xff]  ;;  %v449_v31 = vld [vmem:[#allocation9 + $0x178] sm:$0xff]  ;;  %v3519_v28 = vld [vmem:[%s3792_s4] ss:$0 sm:$0xff] }
  0x6e   :  { %2529 = vmatpush1.bf16.msra.mxu0 %v3365_v17  ;;  %230 = vmatprep.mubr.f32.mxu0 %v3248_v0  ;;  %v3390_v45 = vpack.c.bf16 %v423_v37, %v420_v36  ;;  %v3455_v32 = vpack.c.bf16 %v449_v31, %v446_v30 }
  0x6f   :  { %2531 = vmatprep.subr.bf16.mxu0 %v3368_v18 }
  0x70   :  { %2525 = vmatpush3.bf16.msra.mxu1 %v2522_v23  ;;  %v3436_v23 = vpack.c.bf16 %v447_v19, %v444_v16 }
  0x71   :  { %231 = vmatmul.mubr.f32.gmra.mrb[2].mxu0 %v88_v24  ;;  %2558 = vmatprep.subr.bf16.mxu1 %v3249_v40 }
  0x72   :  { %2533 = vmatpush1.bf16.msra.mxu0 %v3373_v25  ;;  %236 = vmatprep.mubr.f32.mxu0 %v3248_v0 }
  0x73   :  { %2535 = vmatprep.subr.bf16.mxu0 %v3376_v26  ;;  %2136 = vmatmul.mubr.f32.vlgmr.msra.gmra.mrb[0].mxu1 %v88_v24  ;;  %v3440_v24 = vpack.c.bf16 %v437_v22, %v434_v21 }
  0x74   :  { %2560 = vmatpush3.bf16.msra.mxu1 %v3386_v41  ;;  %2138 = vmatprep.mubr.f32.mxu1 %v89_v33 }
  0x75   :  { %237 = vmatmul.mubr.f32.gmra.mrb[4].mxu0 %v89_v33  ;;  %2561 = vmatprep.subr.bf16.mxu1 %v3249_v40  ;;  %v145_v33 = vlaneseq }
  0x76   :  { %2537 = vmatpush1.bf16.msra.mxu0 %v3380_v34  ;;  %242 = vmatprep.mubr.f32.mxu0 %v3248_v0 }
  0x77   :  { %2539 = vmatprep.subr.bf16.mxu0 %v3383_v35  ;;  %2139 = vmatmul.mubr.f32.gmra.mrb[2].mxu1 %v90_v44  ;;  %v146_v36 = vshrl.u32 %v145_v33, 7 }
  0x78   :  { %2563 = vmatpush3.bf16.msra.mxu1 %v3396_v51  ;;  %2141 = vmatprep.mubr.f32.mxu1 %v91_v54 }
  0x79   :  { %243 = vmatmul.mubr.f32.gmra.mrb[6].mxu0 %v90_v44  ;;  %2564 = vmatprep.subr.bf16.mxu1 %v3249_v40  ;;  %v155_v37 = vsub.s32 2, %v146_v36  ;;  %v147_v63 = vsub.s32 0, %v146_v36 }
  0x7a   :  { %2541 = vmatpush1.bf16.msra.mxu0 %v3390_v45  ;;  %248 = vmatprep.mubr.f32.mxu0 %v3248_v0 }
  0x7b   :  { %2543 = vmatprep.subr.bf16.mxu0 %v3393_v46  ;;  %2142 = vmatmul.mubr.f32.gmra.mrb[4].mxu1 %v92_v1  ;;  %v156_v39 = vrot.slane %v143_v38, %v155_v37 }
  0x7c   :  { %2566 = vmatpush3.bf16.msra.mxu1 %v3407_v61  ;;  %2144 = vmatprep.mubr.f32.mxu1 %v93_v3 }
  0x7d   :  { %249 = vmatmul.mubr.f32.gmra.mrb[8].mxu0 %v91_v54  ;;  %2567 = vmatprep.subr.bf16.mxu1 %v3249_v40 }
  0x7e   :  { %2545 = vmatpush1.bf16.msra.mxu0 %v3401_v55  ;;  %254 = vmatprep.mubr.f32.mxu0 %v3248_v0 }
  0x7f   :  { %2547 = vmatprep.subr.bf16.mxu0 %v3404_v56  ;;  %2145 = vmatmul.mubr.f32.gmra.mrb[6].mxu1 %v94_v14 }
  0x80   :  { %2569 = vmatpush3.bf16.msra.mxu1 %v3418_v10  ;;  %2179 = vmatprep.mubr.msk.f32.mxu1 %vm3250_vm0, %v3248_v0 }
  0x81   :  { %255 = vmatmul.mubr.f32.gmra.mrb[10].mxu0 %v92_v1  ;;  %2570 = vmatprep.subr.bf16.mxu1 %v3249_v40  ;;  %v151_v1 = vsub.s32 1, %v146_v36 }
  0x82   :  { %2549 = vmatpush1.bf16.msra.mxu0 %v3412_v2  ;;  %260 = vmatprep.mubr.f32.mxu0 %v3248_v0 }
  0x83   :  { %2551 = vmatprep.subr.bf16.mxu0 %v3415_v4  ;;  %v3512_v6 = vrot.slane %v143_v38, %v151_v1 }
  0x84   :  { %2572 = vmatpush3.bf16.msra.mxu1 %v3429_v20 }
  0x85   :  { %261 = vmatmul.mubr.f32.gmra.mrb[12].mxu0 %v93_v3  ;;  %2573 = vmatprep.subr.bf16.mxu1 %v3249_v40  ;;  %v3510_v3 = vrot.slane %v143_v38, %v147_v63 }
  0x86   :  { %2553 = vmatpush1.bf16.msra.mxu0 %v3423_v13  ;;  %266 = vmatprep.mubr.f32.mxu0 %v3248_v0 }
  0x87   :  { %2555 = vmatprep.subr.bf16.mxu0 %v3426_v15 }
  0x88   :  { %2575 = vmatpush3.bf16.msra.mxu1 %v3440_v24 }
  0x89   :  { %267 = vmatmul.mubr.f32.gmra.mrb[14].mxu0 %v94_v14  ;;  %2576 = vmatprep.subr.bf16.mxu1 %v3249_v40 }
  0x8a   :  { %2557 = vmatpush1.bf16.msra.mxu0 %v3436_v23  ;;  %522 = vmatprep.mubr.f32.mxu0 %v3248_v0 }
  0x8b   :  { %2583 = vmatprep.subr.bf16.mxu0 %v3363_v9 }
  0x8c   :  { %2578 = vmatpush3.bf16.msra.mxu1 %v3447_v29 }
  0x8d   :  { %523 = vmatmul.mubr.f32.vlgmr.msra.gmra.mrb[0].mxu0 %v3248_v0  ;;  %2579 = vmatprep.subr.bf16.mxu1 %v3249_v40 }
  0x8e   :  { %2585 = vmatpush1.bf16.msra.mxu0 %v3365_v17  ;;  %688 = vmatprep.mubr.f32.mxu0 %v3248_v0 }
  0x8f   :  { %2587 = vmatprep.subr.bf16.mxu0 %v3368_v18 }
  0x90   :  { %2581 = vmatpush3.bf16.msra.mxu1 %v3455_v32 }
  0x91   :  { %2614 = vmatprep.subr.bf16.mxu1 %v3249_v40 }
  0x92   :  { %2589 = vmatpush1.bf16.msra.mxu0 %v3373_v25 }
  0x93   :  { %2591 = vmatprep.subr.bf16.mxu0 %v3376_v26  ;;  %2180 = vmatmul.mubr.f32.vlgmr.msra.gmra.mrb[8].mxu1 %v3248_v0 }
  0x94   :  { %2616 = vmatpush3.bf16.msra.mxu1 %v3386_v41  ;;  %2214 = vmatprep.mubr.msk.f32.mxu1 %vm3250_vm0, %v3248_v0 }
  0x95   :  { %2617 = vmatprep.subr.bf16.mxu1 %v3249_v40 }
  0x96   :  { %2593 = vmatpush1.bf16.msra.mxu0 %v3380_v34 }
  0x97   :  { %2595 = vmatprep.subr.bf16.mxu0 %v3383_v35 }
  0x98   :  { %2619 = vmatpush3.bf16.msra.mxu1 %v3396_v51 }
  0x99   :  { %2620 = vmatprep.subr.bf16.mxu1 %v3249_v40 }
  0x9a   :  { %2597 = vmatpush1.bf16.msra.mxu0 %v3390_v45 }
  0x9b   :  { %2599 = vmatprep.subr.bf16.mxu0 %v3393_v46 }
  0x9c   :  { %2622 = vmatpush3.bf16.msra.mxu1 %v3407_v61 }
  0x9d   :  { %2623 = vmatprep.subr.bf16.mxu1 %v3249_v40 }
  0x9e   :  { %2601 = vmatpush1.bf16.msra.mxu0 %v3401_v55 }
  0x9f   :  { %2603 = vmatprep.subr.bf16.mxu0 %v3404_v56 }
  0xa0   :  { %2625 = vmatpush3.bf16.msra.mxu1 %v3418_v10 }
  0xa1   :  { %2626 = vmatprep.subr.bf16.mxu1 %v3249_v40 }
  0xa2   :  { %2605 = vmatpush1.bf16.msra.mxu0 %v3412_v2 }
  0xa3   :  { %2607 = vmatprep.subr.bf16.mxu0 %v3415_v4 }
  0xa4   :  { %2628 = vmatpush3.bf16.msra.mxu1 %v3429_v20 }
  0xa5   :  { %2629 = vmatprep.subr.bf16.mxu1 %v3249_v40 }
  0xa6   :  { %2609 = vmatpush1.bf16.msra.mxu0 %v3423_v13 }
  0xa7   :  { %2611 = vmatprep.subr.bf16.mxu0 %v3426_v15 }
  0xa8   :  { %2631 = vmatpush3.bf16.msra.mxu1 %v3440_v24 }
  0xa9   :  { %2632 = vmatprep.subr.bf16.mxu1 %v3249_v40 }
  0xaa   :  { %2613 = vmatpush1.bf16.msra.mxu0 %v3436_v23 }
  0xab   :  { %2639 = vmatprep.subr.bf16.mxu0 %v3363_v9 }
  0xac   :  { %2634 = vmatpush3.bf16.msra.mxu1 %v3447_v29 }
  0xad   :  { %2635 = vmatprep.subr.bf16.mxu1 %v3249_v40 }
  0xb0   :  { %2637 = vmatpush3.bf16.msra.mxu1 %v3455_v32 }
  0xb1   :  { %2670 = vmatprep.subr.bf16.mxu1 %v3249_v40 }
 0x146   :  { %v2137_v42 = vpop.f32.mrb[0].mxu1 }
 0x147   :  { %v3496_v43 = vadd.f32 %v2137_v42, %v156_v39  ;;  %v339_v44 = vpop.f32.mrb[1].mxu1 }
 0x148   :  { %v340_v36 = vadd.f32 %v339_v44, %v156_v39 }
 0x14a   :  { %v2140_v47 = vpop.f32.mrb[2].mxu1 }
 0x14b   :  { %v3498_v48 = vadd.f32 %v2140_v47, %v156_v39  ;;  %v349_v49 = vpop.f32.mrb[3].mxu1 }
 0x14c   :  { %v3500_v50 = vadd.f32 %v349_v49, %v156_v39 }
 0x14e   :  { %v2143_v52 = vpop.f32.mrb[4].mxu1 }
 0x14f   :  { %v3502_v53 = vadd.f32 %v2143_v52, %v156_v39  ;;  %v359_v54 = vpop.f32.mrb[5].mxu1 }
 0x150   :  { %v3504_v57 = vadd.f32 %v359_v54, %v156_v39 }
 0x152   :  { %v2146_v58 = vpop.f32.mrb[6].mxu1 }
 0x153   :  { %v3506_v59 = vadd.f32 %v2146_v58, %v156_v39  ;;  %v369_v60 = vpop.f32.mrb[7].mxu1 }
 0x154   :  { %v3508_v62 = vadd.f32 %v369_v60, %v156_v39 }
 0x160   :  { %v524_v5 = vpop.f32.mrb[0].mxu0 }
 0x161   :  { %v2998_v7 = vadd.f32 %v524_v5, %v3510_v3  ;;  %v526_v8 = vpop.f32.mrb[1].mxu0 }
 0x162   :  { %v2999_v12 = vadd.f32 %v526_v8, %v3512_v6 }
 0x163   :  { %v1909_v11 = vmul.f32 -1.442695, %v2998_v7 }
 0x164   :  { %v1910_v14 = vmul.f32 -1.442695, %v2999_v12 }
 0x165   :  { %3042 = vpow2.f32 %v1909_v11 }
 0x166   :  { %v595_v16 = vpop.f32.mrb[8].mxu1  ;;  %3044 = vpow2.f32 %v1910_v14 }
 0x167   :  { %v2181_v19 = vpop.f32.mrb[9].mxu1  ;;  %v616_v31 = vadd.f32 %v3519_v28, %v595_v16 }
 0x16f   :  { %v3043_v21 = vpop.eup %3042 }
 0x170   :  { %v606_v22 = vadd.f32 1.0, %v3043_v21  ;;  %v3045_v27 = vpop.eup %3044 }
 0x171   :  { %v613_v30 = vadd.f32 1.0, %v3045_v27 }
 0x172   :  { %3046 = vrcp.f32 %v606_v22 }
 0x173   :  { %3048 = vrcp.f32 %v613_v30 }
 0x17c   :  { %v3047_v33 = vpop.eup %3046 }
 0x17d   :  { %v617_v37 = vmul.f32 %v3047_v33, %v616_v31  ;;  %v3049_v42 = vpop.eup %3048 }
 0x17e   :  { %v620_v47 = vsub.f32 1.0, %v3049_v42  ;;  %v622_v54 = vmul.f32 0.0, %v3049_v42 }
 0x17f   :  { %v618_v38 = vadd.f32 %v617_v37, %v340_v36 }
 0x181   :  { %3050 = vtanh.f32 %v618_v38 }
 0x18b   :  { %v3051_v49 = vpop.eup %3050 }
 0x18c   :  { %v621_v52 = vmul.f32 %v3051_v49, %v620_v47 }
 0x18e   :  { %v623_v58 = vadd.f32 %v622_v54, %v621_v52 }
 0x190   :  { %689 = vmatmul.mubr.f32.vlgmr.msra.gmra.mrb[2].mxu0 %v623_v58  ;;  %2215 = vmatmul.mubr.f32.vlgmr.msra.gmra.mrb[10].mxu1 %v623_v58 }
 0x191   :  { %2641 = vmatpush1.bf16.msra.mxu0 %v3365_v17  ;;  %2672 = vmatpush3.bf16.msra.mxu1 %v3386_v41 }
 0x192   :  { %2643 = vmatprep.subr.bf16.mxu0 %v3368_v18  ;;  %2673 = vmatprep.subr.bf16.mxu1 %v3249_v40 }
 0x193   :  { %855 = vmatprep.mubr.f32.mxu0 %v3248_v0  ;;  %2249 = vmatprep.mubr.msk.f32.mxu1 %vm3250_vm0, %v3248_v0 }
 0x195   :  { %2645 = vmatpush1.bf16.msra.mxu0 %v3373_v25  ;;  %2675 = vmatpush3.bf16.msra.mxu1 %v3396_v51 }
 0x196   :  { %2647 = vmatprep.subr.bf16.mxu0 %v3376_v26  ;;  %2676 = vmatprep.subr.bf16.mxu1 %v3249_v40 }
 0x199   :  { %2649 = vmatpush1.bf16.msra.mxu0 %v3380_v34  ;;  %2678 = vmatpush3.bf16.msra.mxu1 %v3407_v61 }
 0x19a   :  { %2651 = vmatprep.subr.bf16.mxu0 %v3383_v35  ;;  %2679 = vmatprep.subr.bf16.mxu1 %v3249_v40 }
 0x19d   :  { %2653 = vmatpush1.bf16.msra.mxu0 %v3390_v45  ;;  %2681 = vmatpush3.bf16.msra.mxu1 %v3418_v10 }
 0x19e   :  { %2655 = vmatprep.subr.bf16.mxu0 %v3393_v46  ;;  %2682 = vmatprep.subr.bf16.mxu1 %v3249_v40 }
 0x1a1   :  { %2657 = vmatpush1.bf16.msra.mxu0 %v3401_v55  ;;  %2684 = vmatpush3.bf16.msra.mxu1 %v3429_v20 }
 0x1a2   :  { %2659 = vmatprep.subr.bf16.mxu0 %v3404_v56  ;;  %2685 = vmatprep.subr.bf16.mxu1 %v3249_v40 }
 0x1a5   :  { %2661 = vmatpush1.bf16.msra.mxu0 %v3412_v2  ;;  %2687 = vmatpush3.bf16.msra.mxu1 %v3440_v24 }
 0x1a6   :  { %2663 = vmatprep.subr.bf16.mxu0 %v3415_v4  ;;  %2688 = vmatprep.subr.bf16.mxu1 %v3249_v40 }
 0x1a9   :  { %2665 = vmatpush1.bf16.msra.mxu0 %v3423_v13  ;;  %2690 = vmatpush3.bf16.msra.mxu1 %v3447_v29 }
 0x1aa   :  { %2667 = vmatprep.subr.bf16.mxu0 %v3426_v15  ;;  %2691 = vmatprep.subr.bf16.mxu1 %v3249_v40 }
 0x1ad   :  { %2669 = vmatpush1.bf16.msra.mxu0 %v3436_v23  ;;  %2693 = vmatpush3.bf16.msra.mxu1 %v3455_v32 }
 0x1ae   :  { %2695 = vmatprep.subr.bf16.mxu0 %v3363_v9  ;;  %2726 = vmatprep.subr.bf16.mxu1 %v3249_v40 }
 0x263   :  { %v690_v39 = vpop.f32.mrb[2].mxu0  ;;  %v761_v44 = vpop.f32.mrb[10].mxu1 }
 0x264   :  { %v3000_v60 = vadd.f32 %v690_v39, %v3510_v3  ;;  %v692_v63 = vpop.f32.mrb[3].mxu0  ;;  %v2216_v1 = vpop.f32.mrb[11].mxu1  ;;  %v783_v19 = vadd.f32 %v3519_v28, %v761_v44 }
 0x265   :  { %v3001_v7 = vadd.f32 %v692_v63, %v3512_v6 }
 0x266   :  { %v1911_v5 = vmul.f32 -1.442695, %v3000_v60 }
 0x267   :  { %v1912_v8 = vmul.f32 -1.442695, %v3001_v7 }
 0x268   :  { %3052 = vpow2.f32 %v1911_v5 }
 0x269   :  { %3054 = vpow2.f32 %v1912_v8 }
 0x272   :  { %v3053_v11 = vpop.eup %3052 }
 0x273   :  { %v773_v12 = vadd.f32 1.0, %v3053_v11  ;;  %v3055_v14 = vpop.eup %3054 }
 0x274   :  { %v780_v16 = vadd.f32 1.0, %v3055_v14 }
 0x275   :  { %3056 = vrcp.f32 %v773_v12 }
 0x276   :  { %3058 = vrcp.f32 %v780_v16 }
 0x27f   :  { %v3057_v21 = vpop.eup %3056 }
 0x280   :  { %v784_v22 = vmul.f32 %v3057_v21, %v783_v19  ;;  %v3059_v30 = vpop.eup %3058 }
 0x281   :  { %v787_v31 = vsub.f32 1.0, %v3059_v30  ;;  %v789_v37 = vmul.f32 %v3059_v30, %v623_v58 }
 0x282   :  { %v785_v27 = vadd.f32 %v784_v22, %v3496_v43 }
 0x284   :  { %3060 = vtanh.f32 %v785_v27 }
 0x28e   :  { %v3061_v33 = vpop.eup %3060 }
 0x28f   :  { %v788_v36 = vmul.f32 %v3061_v33, %v787_v31 }
 0x291   :  { %v790_v38 = vadd.f32 %v789_v37, %v788_v36 }
 0x293   :  { %856 = vmatmul.mubr.f32.vlgmr.msra.gmra.mrb[4].mxu0 %v790_v38  ;;  %2250 = vmatmul.mubr.f32.vlgmr.msra.gmra.mrb[12].mxu1 %v790_v38 }
 0x294   :  { %2697 = vmatpush1.bf16.msra.mxu0 %v3365_v17  ;;  %2728 = vmatpush3.bf16.msra.mxu1 %v3386_v41 }
 0x295   :  { %2699 = vmatprep.subr.bf16.mxu0 %v3368_v18  ;;  %2729 = vmatprep.subr.bf16.mxu1 %v3249_v40 }
 0x296   :  { %1022 = vmatprep.mubr.f32.mxu0 %v3248_v0  ;;  %2284 = vmatprep.mubr.msk.f32.mxu1 %vm3250_vm0, %v3248_v0 }
 0x298   :  { %2701 = vmatpush1.bf16.msra.mxu0 %v3373_v25  ;;  %2731 = vmatpush3.bf16.msra.mxu1 %v3396_v51 }
 0x299   :  { %2703 = vmatprep.subr.bf16.mxu0 %v3376_v26  ;;  %2732 = vmatprep.subr.bf16.mxu1 %v3249_v40 }
 0x29c   :  { %2705 = vmatpush1.bf16.msra.mxu0 %v3380_v34  ;;  %2734 = vmatpush3.bf16.msra.mxu1 %v3407_v61 }
 0x29d   :  { %2707 = vmatprep.subr.bf16.mxu0 %v3383_v35  ;;  %2735 = vmatprep.subr.bf16.mxu1 %v3249_v40 }
 0x2a0   :  { %2709 = vmatpush1.bf16.msra.mxu0 %v3390_v45  ;;  %2737 = vmatpush3.bf16.msra.mxu1 %v3418_v10 }
 0x2a1   :  { %2711 = vmatprep.subr.bf16.mxu0 %v3393_v46  ;;  %2738 = vmatprep.subr.bf16.mxu1 %v3249_v40 }
 0x2a4   :  { %2713 = vmatpush1.bf16.msra.mxu0 %v3401_v55  ;;  %2740 = vmatpush3.bf16.msra.mxu1 %v3429_v20 }
 0x2a5   :  { %2715 = vmatprep.subr.bf16.mxu0 %v3404_v56  ;;  %2741 = vmatprep.subr.bf16.mxu1 %v3249_v40 }
 0x2a8   :  { %2717 = vmatpush1.bf16.msra.mxu0 %v3412_v2  ;;  %2743 = vmatpush3.bf16.msra.mxu1 %v3440_v24 }
 0x2a9   :  { %2719 = vmatprep.subr.bf16.mxu0 %v3415_v4  ;;  %2744 = vmatprep.subr.bf16.mxu1 %v3249_v40 }
 0x2ac   :  { %2721 = vmatpush1.bf16.msra.mxu0 %v3423_v13  ;;  %2746 = vmatpush3.bf16.msra.mxu1 %v3447_v29 }
 0x2ad   :  { %2723 = vmatprep.subr.bf16.mxu0 %v3426_v15  ;;  %2747 = vmatprep.subr.bf16.mxu1 %v3249_v40 }
 0x2b0   :  { %2725 = vmatpush1.bf16.msra.mxu0 %v3436_v23  ;;  %2749 = vmatpush3.bf16.msra.mxu1 %v3455_v32 }
 0x2b1   :  { %2751 = vmatprep.subr.bf16.mxu0 %v3363_v9  ;;  %2782 = vmatprep.subr.bf16.mxu1 %v3249_v40 }
 0x366   :  { %v857_v43 = vpop.f32.mrb[4].mxu0  ;;  %v928_v42 = vpop.f32.mrb[12].mxu1 }
 0x367   :  { %v3002_v47 = vadd.f32 %v857_v43, %v3510_v3  ;;  %v859_v49 = vpop.f32.mrb[5].mxu0  ;;  %v2251_v52 = vpop.f32.mrb[13].mxu1  ;;  %v950_v5 = vadd.f32 %v3519_v28, %v928_v42 }
 0x368   :  { %v3003_v58 = vadd.f32 %v859_v49, %v3512_v6 }
 0x369   :  { %v1913_v54 = vmul.f32 -1.442695, %v3002_v47 }
 0x36a   :  { %v1914_v39 = vmul.f32 -1.442695, %v3003_v58 }
 0x36b   :  { %3062 = vpow2.f32 %v1913_v54 }
 0x36c   :  { %3064 = vpow2.f32 %v1914_v39 }
 0x375   :  { %v3063_v44 = vpop.eup %3062 }
 0x376   :  { %v940_v60 = vadd.f32 1.0, %v3063_v44  ;;  %v3065_v63 = vpop.eup %3064 }
 0x377   :  { %v947_v1 = vadd.f32 1.0, %v3065_v63 }
 0x378   :  { %3066 = vrcp.f32 %v940_v60 }
 0x379   :  { %3068 = vrcp.f32 %v947_v1 }
 0x382   :  { %v3067_v7 = vpop.eup %3066 }
 0x383   :  { %v951_v8 = vmul.f32 %v3067_v7, %v950_v5  ;;  %v3069_v12 = vpop.eup %3068 }
 0x384   :  { %v954_v14 = vsub.f32 1.0, %v3069_v12  ;;  %v956_v21 = vmul.f32 %v3069_v12, %v790_v38 }
 0x385   :  { %v952_v11 = vadd.f32 %v951_v8, %v3500_v50 }
 0x387   :  { %3070 = vtanh.f32 %v952_v11 }
 0x391   :  { %v3071_v16 = vpop.eup %3070 }
 0x392   :  { %v955_v19 = vmul.f32 %v3071_v16, %v954_v14 }
 0x394   :  { %v957_v22 = vadd.f32 %v956_v21, %v955_v19 }
 0x396   :  { %1023 = vmatmul.mubr.f32.vlgmr.msra.gmra.mrb[6].mxu0 %v957_v22  ;;  %2285 = vmatmul.mubr.f32.vlgmr.msra.gmra.mrb[14].mxu1 %v957_v22 }
 0x397   :  { %2753 = vmatpush1.bf16.msra.mxu0 %v3365_v17  ;;  %2784 = vmatpush3.bf16.msra.mxu1 %v3386_v41 }
 0x398   :  { %2755 = vmatprep.subr.bf16.mxu0 %v3368_v18  ;;  %2785 = vmatprep.subr.bf16.mxu1 %v3249_v40 }
 0x399   :  { %1189 = vmatprep.mubr.f32.mxu0 %v3248_v0  ;;  %2319 = vmatprep.mubr.msk.f32.mxu1 %vm3250_vm0, %v3248_v0 }
 0x39b   :  { %2757 = vmatpush1.bf16.msra.mxu0 %v3373_v25  ;;  %2787 = vmatpush3.bf16.msra.mxu1 %v3396_v51 }
 0x39c   :  { %2759 = vmatprep.subr.bf16.mxu0 %v3376_v26  ;;  %2788 = vmatprep.subr.bf16.mxu1 %v3249_v40 }
 0x39f   :  { %2761 = vmatpush1.bf16.msra.mxu0 %v3380_v34  ;;  %2790 = vmatpush3.bf16.msra.mxu1 %v3407_v61 }
 0x3a0   :  { %2763 = vmatprep.subr.bf16.mxu0 %v3383_v35  ;;  %2791 = vmatprep.subr.bf16.mxu1 %v3249_v40 }
 0x3a3   :  { %2765 = vmatpush1.bf16.msra.mxu0 %v3390_v45  ;;  %2793 = vmatpush3.bf16.msra.mxu1 %v3418_v10 }
 0x3a4   :  { %2767 = vmatprep.subr.bf16.mxu0 %v3393_v46  ;;  %2794 = vmatprep.subr.bf16.mxu1 %v3249_v40 }
 0x3a7   :  { %2769 = vmatpush1.bf16.msra.mxu0 %v3401_v55  ;;  %2796 = vmatpush3.bf16.msra.mxu1 %v3429_v20 }
 0x3a8   :  { %2771 = vmatprep.subr.bf16.mxu0 %v3404_v56  ;;  %2797 = vmatprep.subr.bf16.mxu1 %v3249_v40 }
 0x3ab   :  { %2773 = vmatpush1.bf16.msra.mxu0 %v3412_v2  ;;  %2799 = vmatpush3.bf16.msra.mxu1 %v3440_v24 }
 0x3ac   :  { %2775 = vmatprep.subr.bf16.mxu0 %v3415_v4  ;;  %2800 = vmatprep.subr.bf16.mxu1 %v3249_v40 }
 0x3af   :  { %2777 = vmatpush1.bf16.msra.mxu0 %v3423_v13  ;;  %2802 = vmatpush3.bf16.msra.mxu1 %v3447_v29 }
 0x3b0   :  { %2779 = vmatprep.subr.bf16.mxu0 %v3426_v15  ;;  %2803 = vmatprep.subr.bf16.mxu1 %v3249_v40 }
 0x3b3   :  { %2781 = vmatpush1.bf16.msra.mxu0 %v3436_v23  ;;  %2805 = vmatpush3.bf16.msra.mxu1 %v3455_v32 }
 0x3b4   :  { %2807 = vmatprep.subr.bf16.mxu0 %v3363_v9  ;;  %2838 = vmatprep.subr.bf16.mxu1 %v3249_v40 }
 0x469   :  { %v1024_v50 = vpop.f32.mrb[6].mxu0  ;;  %v1095_v27 = vpop.f32.mrb[14].mxu1 }
 0x46a   :  { %v3004_v30 = vadd.f32 %v1024_v50, %v3510_v3  ;;  %v1026_v31 = vpop.f32.mrb[7].mxu0  ;;  %v2286_v33 = vpop.f32.mrb[15].mxu1  ;;  %v1117_v52 = vadd.f32 %v3519_v28, %v1095_v27 }
 0x46b   :  { %v3005_v37 = vadd.f32 %v1026_v31, %v3512_v6 }
 0x46c   :  { %v1915_v36 = vmul.f32 -1.442695, %v3004_v30 }
 0x46d   :  { %v1916_v38 = vmul.f32 -1.442695, %v3005_v37 }
 0x46e   :  { %3072 = vpow2.f32 %v1915_v36 }
 0x46f   :  { %3074 = vpow2.f32 %v1916_v38 }
 0x478   :  { %v3073_v43 = vpop.eup %3072 }
 0x479   :  { %v1107_v42 = vadd.f32 1.0, %v3073_v43  ;;  %v3075_v47 = vpop.eup %3074 }
 0x47a   :  { %v1114_v49 = vadd.f32 1.0, %v3075_v47 }
 0x47b   :  { %3076 = vrcp.f32 %v1107_v42 }
 0x47c   :  { %3078 = vrcp.f32 %v1114_v49 }
 0x485   :  { %v3077_v54 = vpop.eup %3076 }
 0x486   :  { %v1118_v58 = vmul.f32 %v3077_v54, %v1117_v52  ;;  %v3079_v44 = vpop.eup %3078 }
 0x487   :  { %v1121_v60 = vsub.f32 1.0, %v3079_v44  ;;  %v1123_v5 = vmul.f32 %v3079_v44, %v957_v22 }
 0x488   :  { %v1119_v39 = vadd.f32 %v1118_v58, %v3498_v48 }
 0x48a   :  { %3080 = vtanh.f32 %v1119_v39 }
 0x494   :  { %v3081_v63 = vpop.eup %3080 }
 0x495   :  { %v1122_v1 = vmul.f32 %v3081_v63, %v1121_v60 }
 0x497   :  { %v1124_v7 = vadd.f32 %v1123_v5, %v1122_v1 }
 0x499   :  { %1190 = vmatmul.mubr.f32.vlgmr.msra.gmra.mrb[8].mxu0 %v1124_v7  ;;  %2320 = vmatmul.mubr.f32.vlgmr.msra.gmra.mrb[16].mxu1 %v1124_v7 }
 0x49a   :  { %2809 = vmatpush1.bf16.msra.mxu0 %v3365_v17  ;;  %2840 = vmatpush3.bf16.msra.mxu1 %v3386_v41 }
 0x49b   :  { %2811 = vmatprep.subr.bf16.mxu0 %v3368_v18  ;;  %2841 = vmatprep.subr.bf16.mxu1 %v3249_v40 }
 0x49c   :  { %1356 = vmatprep.mubr.f32.mxu0 %v3248_v0  ;;  %2354 = vmatprep.mubr.msk.f32.mxu1 %vm3250_vm0, %v3248_v0 }
 0x49e   :  { %2813 = vmatpush1.bf16.msra.mxu0 %v3373_v25  ;;  %2843 = vmatpush3.bf16.msra.mxu1 %v3396_v51 }
 0x49f   :  { %2815 = vmatprep.subr.bf16.mxu0 %v3376_v26  ;;  %2844 = vmatprep.subr.bf16.mxu1 %v3249_v40 }
 0x4a2   :  { %2817 = vmatpush1.bf16.msra.mxu0 %v3380_v34  ;;  %2846 = vmatpush3.bf16.msra.mxu1 %v3407_v61 }
 0x4a3   :  { %2819 = vmatprep.subr.bf16.mxu0 %v3383_v35  ;;  %2847 = vmatprep.subr.bf16.mxu1 %v3249_v40 }
 0x4a6   :  { %2821 = vmatpush1.bf16.msra.mxu0 %v3390_v45  ;;  %2849 = vmatpush3.bf16.msra.mxu1 %v3418_v10 }
 0x4a7   :  { %2823 = vmatprep.subr.bf16.mxu0 %v3393_v46  ;;  %2850 = vmatprep.subr.bf16.mxu1 %v3249_v40 }
 0x4aa   :  { %2825 = vmatpush1.bf16.msra.mxu0 %v3401_v55  ;;  %2852 = vmatpush3.bf16.msra.mxu1 %v3429_v20 }
 0x4ab   :  { %2827 = vmatprep.subr.bf16.mxu0 %v3404_v56  ;;  %2853 = vmatprep.subr.bf16.mxu1 %v3249_v40 }
 0x4ae   :  { %2829 = vmatpush1.bf16.msra.mxu0 %v3412_v2  ;;  %2855 = vmatpush3.bf16.msra.mxu1 %v3440_v24 }
 0x4af   :  { %2831 = vmatprep.subr.bf16.mxu0 %v3415_v4  ;;  %2856 = vmatprep.subr.bf16.mxu1 %v3249_v40 }
 0x4b2   :  { %2833 = vmatpush1.bf16.msra.mxu0 %v3423_v13  ;;  %2858 = vmatpush3.bf16.msra.mxu1 %v3447_v29 }
 0x4b3   :  { %2835 = vmatprep.subr.bf16.mxu0 %v3426_v15  ;;  %2859 = vmatprep.subr.bf16.mxu1 %v3249_v40 }
 0x4b6   :  { %2837 = vmatpush1.bf16.msra.mxu0 %v3436_v23  ;;  %2861 = vmatpush3.bf16.msra.mxu1 %v3455_v32 }
 0x4b7   :  { %2863 = vmatprep.subr.bf16.mxu0 %v3363_v9  ;;  %2894 = vmatprep.subr.bf16.mxu1 %v3249_v40 }
 0x56c   :  { %v1191_v48 = vpop.f32.mrb[8].mxu0  ;;  %v1262_v8 = vpop.f32.mrb[16].mxu1 }
 0x56d   :  { %v3006_v11 = vadd.f32 %v1191_v48, %v3510_v3  ;;  %v1193_v12 = vpop.f32.mrb[9].mxu0  ;;  %v2321_v14 = vpop.f32.mrb[17].mxu1  ;;  %v1284_v31 = vadd.f32 %v3519_v28, %v1262_v8 }
 0x56e   :  { %v3007_v19 = vadd.f32 %v1193_v12, %v3512_v6 }
 0x56f   :  { %v1917_v16 = vmul.f32 -1.442695, %v3006_v11 }
 0x570   :  { %v1918_v21 = vmul.f32 -1.442695, %v3007_v19 }
 0x571   :  { %3082 = vpow2.f32 %v1917_v16 }
 0x572   :  { %3084 = vpow2.f32 %v1918_v21 }
 0x57b   :  { %v3083_v22 = vpop.eup %3082 }
 0x57c   :  { %v1274_v50 = vadd.f32 1.0, %v3083_v22  ;;  %v3085_v27 = vpop.eup %3084 }
 0x57d   :  { %v1281_v30 = vadd.f32 1.0, %v3085_v27 }
 0x57e   :  { %3086 = vrcp.f32 %v1274_v50 }
 0x57f   :  { %3088 = vrcp.f32 %v1281_v30 }
 0x588   :  { %v3087_v33 = vpop.eup %3086 }
 0x589   :  { %v1285_v36 = vmul.f32 %v3087_v33, %v1284_v31  ;;  %v3089_v38 = vpop.eup %3088  ;;  %v1800_v31 = vld [vmem:[#allocation10 + $0x18] sm:$0xff] }
 0x58a   :  { %v1288_v43 = vsub.f32 1.0, %v3089_v38  ;;  %v1290_v49 = vmul.f32 %v3089_v38, %v1124_v7 }
 0x58b   :  { %v1286_v37 = vadd.f32 %v1285_v36, %v3504_v57  ;;  %v1801_v36 = vld [vmem:[#allocation10 + $0x20] sm:$0xff] }
 0x58d   :  { %3090 = vtanh.f32 %v1286_v37  ;;  %v1802_v37 = vld [vmem:[#allocation10 + $0x28] sm:$0xff] }
 0x58e   :  { %v2981_v38 = vpack.c.bf16 %v1802_v37, %v1801_v36 }
 0x597   :  { %v3091_v42 = vpop.eup %3090 }
 0x598   :  { %v1289_v47 = vmul.f32 %v3091_v42, %v1288_v43  ;;  %v1803_v43 = vld [vmem:[#allocation10 + $0x30] sm:$0xff] }
 0x59a   :  { %v1291_v52 = vadd.f32 %v1290_v49, %v1289_v47  ;;  %v1805_v47 = vld [vmem:[#allocation10 + $0x40] sm:$0xff]  ;;  %v1806_v49 = vld [vmem:[#allocation10 + $0x48] sm:$0xff] }
 0x59c   :  { %1357 = vmatmul.mubr.f32.vlgmr.msra.gmra.mrb[10].mxu0 %v1291_v52  ;;  %2355 = vmatmul.mubr.f32.vlgmr.msra.gmra.mrb[18].mxu1 %v1291_v52 }
 0x59d   :  { %2865 = vmatpush1.bf16.msra.mxu0 %v3365_v17  ;;  %2896 = vmatpush3.bf16.msra.mxu1 %v3386_v41 }
 0x59e   :  { %2867 = vmatprep.subr.bf16.mxu0 %v3368_v18  ;;  %2897 = vmatprep.subr.bf16.mxu1 %v3249_v40 }
 0x59f   :  { %1523 = vmatprep.mubr.f32.mxu0 %v3248_v0  ;;  %2389 = vmatprep.mubr.msk.f32.mxu1 %vm3250_vm0, %v3248_v0 }
 0x5a1   :  { %2869 = vmatpush1.bf16.msra.mxu0 %v3373_v25  ;;  %2899 = vmatpush3.bf16.msra.mxu1 %v3396_v51 }
 0x5a2   :  { %2871 = vmatprep.subr.bf16.mxu0 %v3376_v26  ;;  %2900 = vmatprep.subr.bf16.mxu1 %v3249_v40 }
 0x5a5   :  { %2873 = vmatpush1.bf16.msra.mxu0 %v3380_v34  ;;  %2902 = vmatpush3.bf16.msra.mxu1 %v3407_v61 }
 0x5a6   :  { %2875 = vmatprep.subr.bf16.mxu0 %v3383_v35  ;;  %2903 = vmatprep.subr.bf16.mxu1 %v3249_v40 }
 0x5a9   :  { %2877 = vmatpush1.bf16.msra.mxu0 %v3390_v45  ;;  %2905 = vmatpush3.bf16.msra.mxu1 %v3418_v10 }
 0x5aa   :  { %2879 = vmatprep.subr.bf16.mxu0 %v3393_v46  ;;  %2906 = vmatprep.subr.bf16.mxu1 %v3249_v40 }
 0x5ad   :  { %2881 = vmatpush1.bf16.msra.mxu0 %v3401_v55  ;;  %2908 = vmatpush3.bf16.msra.mxu1 %v3429_v20 }
 0x5ae   :  { %2883 = vmatprep.subr.bf16.mxu0 %v3404_v56  ;;  %2909 = vmatprep.subr.bf16.mxu1 %v3249_v40 }
 0x5b1   :  { %2885 = vmatpush1.bf16.msra.mxu0 %v3412_v2  ;;  %2911 = vmatpush3.bf16.msra.mxu1 %v3440_v24 }
 0x5b2   :  { %2887 = vmatprep.subr.bf16.mxu0 %v3415_v4  ;;  %2912 = vmatprep.subr.bf16.mxu1 %v3249_v40 }
 0x5b5   :  { %2889 = vmatpush1.bf16.msra.mxu0 %v3423_v13  ;;  %2914 = vmatpush3.bf16.msra.mxu1 %v3447_v29 }
 0x5b6   :  { %2891 = vmatprep.subr.bf16.mxu0 %v3426_v15  ;;  %2915 = vmatprep.subr.bf16.mxu1 %v3249_v40 }
 0x5b9   :  { %2893 = vmatpush1.bf16.msra.mxu0 %v3436_v23  ;;  %2917 = vmatpush3.bf16.msra.mxu1 %v3455_v32 }
 0x5ba   :  { %2919 = vmatprep.subr.bf16.mxu0 %v3363_v9  ;;  %2950 = vmatprep.subr.bf16.mxu1 %v3249_v40 }
 0x66f   :  { %v1358_v57 = vpop.f32.mrb[10].mxu0  ;;  %v1429_v54 = vpop.f32.mrb[18].mxu1 }
 0x670   :  { %v3008_v58 = vadd.f32 %v1358_v57, %v3510_v3  ;;  %v1360_v39 = vpop.f32.mrb[11].mxu0  ;;  %v2356_v44 = vpop.f32.mrb[19].mxu1  ;;  %v1451_v9 = vadd.f32 %v3519_v28, %v1429_v54  ;;  %v1807_v57 = vld [vmem:[#allocation10 + $0x50] sm:$0xff]  ;;  %v1808_v54 = vld [vmem:[#allocation10 + $0x58] sm:$0xff] }
 0x671   :  { %v3009_v63 = vadd.f32 %v1360_v39, %v3512_v6  ;;  %v1809_v39 = vld [vmem:[#allocation10 + $0x60] sm:$0xff]  ;;  %v1810_v44 = vld [vmem:[#allocation10 + $0x68] sm:$0xff] }
 0x672   :  { %v1919_v60 = vmul.f32 -1.442695, %v3008_v58  ;;  %v2990_v58 = vpack.c.bf16 %v1808_v54, %v1807_v57 }
 0x673   :  { %v1920_v1 = vmul.f32 -1.442695, %v3009_v63  ;;  %v1811_v63 = vld [vmem:[#allocation10 + $0x70] sm:$0xff] }
 0x674   :  { %3092 = vpow2.f32 %v1919_v60  ;;  %v2993_v60 = vpack.c.bf16 %v1810_v44, %v1809_v39 }
 0x675   :  { %3094 = vpow2.f32 %v1920_v1  ;;  %v1812_v1 = vld [vmem:[#allocation10 + $0x78] sm:$0xff] }
 0x67e   :  { %v3093_v5 = vpop.eup %3092 }
 0x67f   :  { %v1441_v7 = vadd.f32 1.0, %v3093_v5  ;;  %v3095_v48 = vpop.eup %3094  ;;  %v2996_v5 = vpack.c.bf16 %v1812_v1, %v1811_v63 }
 0x680   :  { %v1448_v8 = vadd.f32 1.0, %v3095_v48 }
 0x681   :  { %3096 = vrcp.f32 %v1441_v7 }
 0x682   :  { %3098 = vrcp.f32 %v1448_v8 }
 0x68b   :  { %v3097_v11 = vpop.eup %3096 }
 0x68c   :  { %v1452_v12 = vmul.f32 %v3097_v11, %v1451_v9  ;;  %v3099_v16 = vpop.eup %3098 }
 0x68d   :  { %v1455_v19 = vsub.f32 1.0, %v3099_v16  ;;  %v1457_v50 = vmul.f32 %v3099_v16, %v1291_v52  ;;  %v2987_v52 = vpack.c.bf16 %v1806_v49, %v1805_v47 }
 0x68e   :  { %v1453_v14 = vadd.f32 %v1452_v12, %v3502_v53  ;;  %v1798_v53 = vld [vmem:[#allocation10 + $0x8] sm:$0xff] }
 0x690   :  { %3100 = vtanh.f32 %v1453_v14 }
 0x69a   :  { %v3101_v21 = vpop.eup %3100 }
 0x69b   :  { %v1456_v22 = vmul.f32 %v3101_v21, %v1455_v19 }
 0x69d   :  { %v1458_v27 = vadd.f32 %v1457_v50, %v1456_v22 }
 0x69f   :  { %1524 = vmatmul.mubr.f32.vlgmr.msra.gmra.mrb[12].mxu0 %v1458_v27  ;;  %2390 = vmatmul.mubr.f32.vlgmr.msra.gmra.mrb[20].mxu1 %v1458_v27 }
 0x6a0   :  { %2921 = vmatpush1.bf16.msra.mxu0 %v3365_v17  ;;  %2952 = vmatpush3.bf16.msra.mxu1 %v3386_v41 }
 0x6a1   :  { %2923 = vmatprep.subr.bf16.mxu0 %v3368_v18  ;;  %2953 = vmatprep.subr.bf16.mxu1 %v3249_v40 }
 0x6a2   :  { %1690 = vmatprep.mubr.f32.mxu0 %v3248_v0  ;;  %2424 = vmatprep.mubr.msk.f32.mxu1 %vm3250_vm0, %v3248_v0 }
 0x6a4   :  { %2925 = vmatpush1.bf16.msra.mxu0 %v3373_v25  ;;  %2955 = vmatpush3.bf16.msra.mxu1 %v3396_v51 }
 0x6a5   :  { %2927 = vmatprep.subr.bf16.mxu0 %v3376_v26  ;;  %2956 = vmatprep.subr.bf16.mxu1 %v3249_v40 }
 0x6a8   :  { %2929 = vmatpush1.bf16.msra.mxu0 %v3380_v34  ;;  %2958 = vmatpush3.bf16.msra.mxu1 %v3407_v61 }
 0x6a9   :  { %2931 = vmatprep.subr.bf16.mxu0 %v3383_v35  ;;  %2959 = vmatprep.subr.bf16.mxu1 %v3249_v40 }
 0x6ac   :  { %2933 = vmatpush1.bf16.msra.mxu0 %v3390_v45  ;;  %2961 = vmatpush3.bf16.msra.mxu1 %v3418_v10 }
 0x6ad   :  { %2935 = vmatprep.subr.bf16.mxu0 %v3393_v46  ;;  %2962 = vmatprep.subr.bf16.mxu1 %v3249_v40 }
 0x6b0   :  { %2937 = vmatpush1.bf16.msra.mxu0 %v3401_v55  ;;  %2964 = vmatpush3.bf16.msra.mxu1 %v3429_v20 }
 0x6b1   :  { %2939 = vmatprep.subr.bf16.mxu0 %v3404_v56  ;;  %2965 = vmatprep.subr.bf16.mxu1 %v3249_v40 }
 0x6b4   :  { %2941 = vmatpush1.bf16.msra.mxu0 %v3412_v2  ;;  %2967 = vmatpush3.bf16.msra.mxu1 %v3440_v24 }
 0x6b5   :  { %2943 = vmatprep.subr.bf16.mxu0 %v3415_v4  ;;  %2968 = vmatprep.subr.bf16.mxu1 %v3249_v40 }
 0x6b8   :  { %2945 = vmatpush1.bf16.msra.mxu0 %v3423_v13  ;;  %2970 = vmatpush3.bf16.msra.mxu1 %v3447_v29 }
 0x6b9   :  { %2947 = vmatprep.subr.bf16.mxu0 %v3426_v15  ;;  %2971 = vmatprep.subr.bf16.mxu1 %v3249_v40 }
 0x6bc   :  { %2949 = vmatpush1.bf16.msra.mxu0 %v3436_v23  ;;  %2973 = vmatpush3.bf16.msra.mxu1 %v3455_v32  ;;  %v1797_v32 = vld [vmem:[#allocation10] sm:$0xff] }
 0x6bd   :  { %2974 = vmatprep.subr.bf16.mxu0 %v3249_v40  ;;  %v2975_v30 = vpack.c.bf16 %v1798_v53, %v1797_v32 }
 0x772   :  { %v1525_v17 = vpop.f32.mrb[12].mxu0  ;;  %v1596_v18 = vpop.f32.mrb[20].mxu1 }
 0x773   :  { %v3010_v25 = vadd.f32 %v1525_v17, %v3510_v3  ;;  %v1527_v26 = vpop.f32.mrb[13].mxu0  ;;  %v2391_v34 = vpop.f32.mrb[21].mxu1  ;;  %v1618_v61 = vadd.f32 %v3519_v28, %v1596_v18 }
 0x774   :  { %v3011_v41 = vadd.f32 %v1527_v26, %v3512_v6 }
 0x775   :  { %v1921_v35 = vmul.f32 -1.442695, %v3010_v25 }
 0x776   :  { %v1922_v45 = vmul.f32 -1.442695, %v3011_v41  ;;  %v1925_v41 = vld [vmem:[%s3794_s6] ss:$0 sm:$0xff] }
 0x777   :  { %3102 = vpow2.f32 %v1921_v35 }
 0x778   :  { %3104 = vpow2.f32 %v1922_v45 }
 0x781   :  { %v3103_v46 = vpop.eup %3102 }
 0x782   :  { %v1608_v51 = vadd.f32 1.0, %v3103_v46  ;;  %v3105_v55 = vpop.eup %3104 }
 0x783   :  { %v1615_v56 = vadd.f32 1.0, %v3105_v55 }
 0x784   :  { %3106 = vrcp.f32 %v1608_v51 }
 0x785   :  { %3108 = vrcp.f32 %v1615_v56 }
 0x78e   :  { %v3107_v2 = vpop.eup %3106 }
 0x78f   :  { %v1619_v4 = vmul.f32 %v3107_v2, %v1618_v61  ;;  %v3109_v13 = vpop.eup %3108 }
 0x790   :  { %v1622_v15 = vsub.f32 1.0, %v3109_v13  ;;  %v1624_v24 = vmul.f32 %v3109_v13, %v1458_v27 }
 0x791   :  { %v1620_v10 = vadd.f32 %v1619_v4, %v3508_v62  ;;  %v1799_v62 = vld [vmem:[#allocation10 + $0x10] sm:$0xff] }
 0x792   :  { %v2978_v33 = vpack.c.bf16 %v1800_v31, %v1799_v62 }
 0x793   :  { %3110 = vtanh.f32 %v1620_v10 }
 0x79d   :  { %v3111_v20 = vpop.eup %3110 }
 0x79e   :  { %v1623_v23 = vmul.f32 %v3111_v20, %v1622_v15 }
 0x7a0   :  { %v3755_v29 = vadd.f32 %v1624_v24, %v1623_v23 }
 0x7a2   :  { %1691 = vmatmul.mubr.f32.vlgmr.msra.gmra.mrb[14].mxu0 %v3755_v29  ;;  %2425 = vmatmul.mubr.f32.vlgmr.msra.gmra.mrb[22].mxu1 %v3755_v29 }
 0x7a3   :  { %2459 = vmatprep.mubr.msk.f32.mxu0 %vm3250_vm0, %v3248_v0  ;;  %2976 = vmatpush3.bf16.msra.mxu0 %v2975_v30  ;;  %v1804_v0 = vld [vmem:[#allocation10 + $0x38] sm:$0xff] }
 0x7a4   :  { %2977 = vmatprep.subr.bf16.mxu0 %v3249_v40  ;;  %v2984_v42 = vpack.c.bf16 %v1804_v0, %v1803_v43 }
 0x7a7   :  { %2979 = vmatpush3.bf16.msra.mxu0 %v2978_v33 }
 0x7a8   :  { %2980 = vmatprep.subr.bf16.mxu0 %v3249_v40 }
 0x7ab   :  { %2982 = vmatpush3.bf16.msra.mxu0 %v2981_v38 }
 0x7ac   :  { %2983 = vmatprep.subr.bf16.mxu0 %v3249_v40 }
 0x7af   :  { %2985 = vmatpush3.bf16.msra.mxu0 %v2984_v42 }
 0x7b0   :  { %2986 = vmatprep.subr.bf16.mxu0 %v3249_v40 }
 0x7b3   :  { %2988 = vmatpush3.bf16.msra.mxu0 %v2987_v52 }
 0x7b4   :  { %2989 = vmatprep.subr.bf16.mxu0 %v3249_v40 }
 0x7b7   :  { %2991 = vmatpush3.bf16.msra.mxu0 %v2990_v58 }
 0x7b8   :  { %2992 = vmatprep.subr.bf16.mxu0 %v3249_v40 }
 0x7bb   :  { %2994 = vmatpush3.bf16.msra.mxu0 %v2993_v60 }
 0x7bc   :  { %2995 = vmatprep.subr.bf16.mxu0 %v3249_v40 }
 0x7bf   :  { %2997 = vmatpush3.bf16.msra.mxu0 %v2996_v5 }
 0x875   :  { %v1692_v7 = vpop.f32.mrb[14].mxu0  ;;  %v1763_v48 = vpop.f32.mrb[22].mxu1 }
 0x876   :  { %v3012_v8 = vadd.f32 %v1692_v7, %v3510_v3  ;;  %v1694_v9 = vpop.f32.mrb[15].mxu0  ;;  %v2426_v11 = vpop.f32.mrb[23].mxu1  ;;  %v1785_v40 = vadd.f32 %v3519_v28, %v1763_v48 }
 0x877   :  { %v3013_v14 = vadd.f32 %v1694_v9, %v3512_v6 }
 0x878   :  { %v1923_v12 = vmul.f32 -1.442695, %v3012_v8 }
 0x879   :  { %v1924_v16 = vmul.f32 -1.442695, %v3013_v14 }
 0x87a   :  { %3112 = vpow2.f32 %v1923_v12 }
 0x87b   :  { %3114 = vpow2.f32 %v1924_v16 }
 0x884   :  { %v3113_v19 = vpop.eup %3112 }
 0x885   :  { %v1775_v21 = vadd.f32 1.0, %v3113_v19  ;;  %v3115_v22 = vpop.eup %3114 }
 0x886   :  { %v1782_v50 = vadd.f32 1.0, %v3115_v22 }
 0x887   :  { %3116 = vrcp.f32 %v1775_v21 }
 0x888   :  { %3118 = vrcp.f32 %v1782_v50 }
 0x891   :  { %v3117_v27 = vpop.eup %3116 }
 0x892   :  { %v1786_v17 = vmul.f32 %v3117_v27, %v1785_v40  ;;  %v3119_v18 = vpop.eup %3118 }
 0x893   :  { %v1789_v25 = vsub.f32 1.0, %v3119_v18  ;;  %v1791_v34 = vmul.f32 %v3119_v18, %v3755_v29 }
 0x894   :  { %v1787_v3 = vadd.f32 %v1786_v17, %v3506_v59 }
 0x896   :  { %3120 = vtanh.f32 %v1787_v3 }
 0x8a0   :  { %v3121_v26 = vpop.eup %3120 }
 0x8a1   :  { %v1790_v6 = vmul.f32 %v3121_v26, %v1789_v25 }
 0x8a3   :  { %v1792_v35 = vadd.f32 %v1791_v34, %v1790_v6 }
 0x8a5   :  { %2460 = vmatmul.mubr.f32.vlgmr.msra.gmra.mrb[16].mxu0 %v1792_v35 }
 0x978   :  { %v1886_v28 = vpop.f32.mrb[16].mxu0 }
 0x979   :  { %v1887_v45 = vadd.f32 %v1925_v41, %v1886_v28  ;;  %v2461_v46 = vpop.f32.mrb[17].mxu0 }
 0x97b   :  { %1890 = vst [vmem:[#allocation12] sm:$0xff] %v1887_v45 }
 0x97c   :  { %3221 = shalt.err (!%p3218_p8)
}
 0x97d   :  { %s3222_s13 = scalar_lea.hbm %s3795_s7, 128 }
 0x97e   :  { %p3223_p9 = scmp.ne.s32.totalorder %s3795_s7, %s3222_s13  ;;  %p3226_p10 = scmp.lt.u32.totalorder %s3222_s13, %s3795_s7 }
 0x980   :  { %p3228_p11 = pnand %p3226_p10, %p3223_p9 }
 0x982   :  { %3231 = shalt.err (!%p3228_p11)
}
 0x983   :  { %1900 = dma.vmem_to_hbm [thread:$0]  %s1898_s30, 128, %s3795_s7, [#allocation6]  }
 0x984   :  { %3238 = dma.done.wait [#allocation6], 128  }
 0x985   :  { %3239 = vsyncadd [#allocation6], 4294967168 }
 0x986   :  { %1904 = vsyncpa [#allocation5], 1 }
 0x987   :  { %1905 = vsyncpa [#allocation8], 1 }
 0x988   :  { %1906 = vsyncpa [#allocation11], 1 }
 0x989   :  { %1907 = vsyncpa [#allocation6], 1 }

</bundles_post_ra>
